<compile_context>
chip_gen: v5e
topology: v5e:2x2
jax: 0.10.0
libtpu: 0.0.40
codegen_flags: <defaults>
</compile_context>

<pallas_src>
import functools

import jax
import jax.numpy as jnp
from jax.experimental import pallas as pl
from jax.experimental.pallas import tpu as pltpu

NEG_SLOPE = 0.01  # nn.LeakyReLU default negative_slope


# ------------------------------ fused Pallas kernel --------------------------

def _fused_forward_kernel(p1_ref, w_ref, o_ref, *, bp, cin, h_units, relu_flags, offs):
    """Whole BranchedConvReg forward on VMEM-resident data.

    p1_ref : (40*bp, 25*cin)  conv1 patch matrix, rows (par1, par2, k2, pos, batch),
                               cols (conv2-tap, cin, conv1-tap).
    w_ref  : packed weight slab; `offs` gives static row offsets (all 8-aligned).
    o_ref  : (bp, 128) output slab; lane 0 = arrival, lane 1 = height.
    """

    def leaky(v):  # LeakyReLU(0.01); maximum form is exact for 0 < slope < 1
        return jnp.maximum(v, NEG_SLOPE * v)

    def mm(a, b):
        return jnp.dot(a, b, preferred_element_type=jnp.float32)

    def wslice(name, rows, cols):
        r0 = offs[name]
        return w_ref[r0:r0 + rows, 0:cols]

    k_cols = 5 * cin * 5  # conv1 patch columns after the 5-tap block-diag fold

    # ---- stage 1: Conv1d(Cin->32, k=5, s=5) + LeakyReLU + MaxPool1d(2) -------
    # One block-diagonal matmul; its 160 output lanes are (conv2-tap, channel)-major.
    y1 = leaky(mm(p1_ref[...], wslice("w1", k_cols, 160)) + wslice("b1", 1, 160))  # (40*bp,160)
    half = 20 * bp
    f1 = jnp.maximum(y1[:half], y1[half:])                                         # (20*bp,160)

    # ---- stage 2: Conv1d(32->64, k=5, s=5) + LeakyReLU + MaxPool1d(2) --------
    # The 5 conv taps are already in lanes -> ONE K=160 matmul.
    y2 = leaky(mm(f1, wslice("w2", 160, 64)) + wslice("b2", 1, 64))                # (20*bp,64)
    half = 10 * bp
    f2 = jnp.maximum(y2[:half], y2[half:])                                         # (10*bp,64)

    # ---- stage 3: Conv1d(64->128, k=2, s=2) + LeakyReLU ----------------------
    w3 = wslice("w3", 128, 128)
    blk = 5 * bp
    y3 = leaky(mm(f2[:blk], w3[0:64]) + mm(f2[blk:], w3[64:128])
               + wslice("b3", 1, 128))                    # (5*bp,128), rows = (position, batch)

    # ---- heads, first layers (fused along N: [arrival 128-padded | height h]) ----
    nh = 128 + h_units
    wh0 = wslice("wh0", 640, nh)
    h0 = wslice("bh0", 1, nh)
    for l in range(5):
        h0 = h0 + mm(y3[l * bp:(l + 1) * bp], wh0[l * 128:(l + 1) * 128])          # (bp, nh)

    a = leaky(h0[:, 0:128])                 # arrival hidden (lanes 100..127 are exactly 0)
    h = h0[:, 128:nh]                       # height hidden (bp, h_units)

    # height head hidden layers: [optional ReLU] Linear(h,h)   (Dropout = identity in eval)
    for i, relu_before in enumerate(relu_flags):
        if relu_before:
            h = jnp.maximum(h, 0.0)
        woff, boff = offs["tail"][i]
        h = mm(h, w_ref[woff:woff + h_units, 0:h_units]) + w_ref[boff:boff + 1, 0:h_units]

    # ---- final joint linear: arrival Linear(100,1) (+) height Linear(h,1) ----
    # packed into 128 output lanes (lane 0 = arrival, lane 1 = height) -> one dense store.
    out = (mm(a, wslice("wfa", 128, 128)) + mm(h, wslice("wfh", h_units, 128))
           + wslice("bf", 1, 128))
    o_ref[...] = out.astype(o_ref.dtype)


# ------------------------------ parameters ------------------------------------

def init_params(key, in_channels, h_hidden_units, h_hidden_layers):
    """Parameters in the natural (PyTorch-equivalent) layout:
       conv weights as (Cin*K, Cout) with rows ordered (cin, k); linears as (in, out)."""
    keys = iter(jax.random.split(key, 2 * (7 + h_hidden_layers) + 2))

    def lin(k_in, k_out):
        kw, kb = next(keys), next(keys)
        s = float(k_in) ** -0.5
        w = jax.random.uniform(kw, (k_in, k_out), jnp.float32, -s, s)
        b = jax.random.uniform(kb, (1, k_out), jnp.float32, -s, s)
        return w, b

    p = {}
    p["conv1_w"], p["conv1_b"] = lin(in_channels * 5, 32)
    p["conv2_w"], p["conv2_b"] = lin(32 * 5, 64)
    p["conv3_w"], p["conv3_b"] = lin(64 * 2, 128)
    p["arr_w0"], p["arr_b0"] = lin(128 * 5, 100)
    p["arr_w1"], p["arr_b1"] = lin(100, 1)
    p["h_w0"], p["h_b0"] = lin(128 * 5, h_hidden_units)

    # hidden_layers_list(): ReLU is inserted *before* the linear at idx == n // 2.
    tail = []
    for idx in range(h_hidden_layers):
        w, b = lin(h_hidden_units, h_hidden_units)
        tail.append((w, b, idx == h_hidden_layers // 2))
    w, b = lin(h_hidden_units, 1)
    tail.append((w, b, False))
    p["h_tail"] = tail
    return p


def prepare_kernel_params(p, in_channels, h_hidden_units):
    """One-time weight transforms + packing into a single contiguous f32 slab."""
    cin, hu = in_channels, h_hidden_units
    f32 = jnp.float32

    def fold_kc(w, cin_, k_):
        # rows (cin, k) -> (k, cin): each conv tap becomes a contiguous row block.
        cout = w.shape[1]
        return w.reshape(cin_, k_, cout).transpose(1, 0, 2).reshape(cin_ * k_, cout)

    def fold_flatten(w):
        # rows (c*5 + pos) [PyTorch NCL flatten] -> (pos*128 + c) [kernel feature order].
        n = w.shape[1]
        return w.reshape(128, 5, n).transpose(1, 0, 2).reshape(640, n)

    # conv1: block-diagonal over the 5 conv2 taps -> output lanes land (tap, channel)-major.
    k1n = cin * 5
    w1_bd = jnp.zeros((5 * k1n, 160), f32)
    for t in range(5):
        w1_bd = w1_bd.at[t * k1n:(t + 1) * k1n, t * 32:(t + 1) * 32].set(p["conv1_w"])
    b1_t = jnp.tile(p["conv1_b"], (1, 5))                            # (1, 160)

    w2 = fold_kc(p["conv2_w"], 32, 5)                                # (160, 64)
    w3 = fold_kc(p["conv3_w"], 64, 2)                                # (128, 128)

    wa0 = jnp.pad(fold_flatten(p["arr_w0"]), ((0, 0), (0, 28)))      # (640, 128)
    ba0 = jnp.pad(p["arr_b0"], ((0, 0), (0, 28)))                    # (1, 128)
    wh0 = fold_flatten(p["h_w0"])                                    # (640, hu)
    w_h0 = jnp.concatenate([wa0, wh0], axis=1)                       # (640, 128+hu)
    b_h0 = jnp.concatenate([ba0, p["h_b0"]], axis=1)                 # (1, 128+hu)

    hidden = p["h_tail"][:-1]
    final_w, final_b, final_relu = p["h_tail"][-1]
    assert not final_relu
    relu_flags = tuple(bool(r) for (_, _, r) in hidden)

    # final joint linear -> 128 output lanes (lane 0 = arrival, lane 1 = height).
    wfa = jnp.zeros((128, 128), f32).at[:100, 0:1].set(p["arr_w1"])
    wfh = jnp.zeros((hu, 128), f32).at[:, 1:2].set(final_w)
    bf = (jnp.zeros((1, 128), f32)
          .at[0, 0].set(p["arr_b1"][0, 0])
          .at[0, 1].set(final_b[0, 0]))

    arrays = {"w1": w1_bd, "b1": b1_t, "w2": w2, "b2": p["conv2_b"],
              "w3": w3, "b3": p["conv3_b"], "wh0": w_h0, "bh0": b_h0,
              "wfa": wfa, "wfh": wfh, "bf": bf}
    order = ["w1", "b1", "w2", "b2", "w3", "b3", "wh0", "bh0"]
    tail_names = []
    for i, (w, b, _) in enumerate(hidden):
        arrays[f"tw{i}"], arrays[f"tb{i}"] = w, b
        order += [f"tw{i}", f"tb{i}"]
        tail_names.append((f"tw{i}", f"tb{i}"))
    order += ["wfa", "wfh", "bf"]

    width = max(a.shape[1] for a in arrays.values())     # = max(160, 128 + hu)
    offs, rows, r = {}, [], 0
    for name in order:
        a = arrays[name]
        pad_r = (-a.shape[0]) % 8                         # keep every slice offset 8-aligned
        rows.append(jnp.pad(a, ((0, pad_r), (0, width - a.shape[1]))))
        offs[name] = r
        r += a.shape[0] + pad_r
    slab = jnp.concatenate(rows, axis=0)                  # ONE contiguous weight slab
    offs["tail"] = tuple((offs[w], offs[b]) for (w, b) in tail_names)

    layout = dict(cin=cin, h_units=hu, relu_flags=relu_flags, offs=offs)
    return slab, layout


# ------------------------------ forward wrapper --------------------------------

def make_forward(layout):
    cin = layout["cin"]
    hu = layout["h_units"]
    relu_flags = layout["relu_flags"]
    offs = layout["offs"]

    @jax.jit
    def forward(x, slab):
        B = x.shape[0]
        assert x.shape[1] == cin and x.shape[2] == 1000, \
            "BranchedConvReg requires (B, Cin, 1000) input (Linear(128*5, ...))"
        Bp = ((B + 7) // 8) * 8                       # pad batch -> all sublane slices aligned
        xp = jnp.pad(x, ((0, Bp - B), (0, 0), (0, 0)))

        # conv1 patch matrix: rows (pool1-parity, pool2-parity, conv3-tap, position, batch),
        # cols (conv2-tap, cin, conv1-tap)  ->  one fused XLA transpose-copy (~128 KB).
        xr = xp.reshape(Bp, cin, 5, 2, 2, 5, 2, 5)    # [b, cin, pos, k2, par2, k1, par1, kk]
        p1 = xr.transpose(6, 4, 3, 2, 0, 5, 1, 7).reshape(40 * Bp, 5 * cin * 5)

        kern = functools.partial(_fused_forward_kernel, bp=Bp, cin=cin,
                                 h_units=hu, relu_flags=relu_flags, offs=offs)
        out = pl.pallas_call(
            kern,
            out_shape=jax.ShapeDtypeStruct((Bp, 128), jnp.float32),
            grid=(1,),
            in_specs=[pl.BlockSpec(p1.shape, lambda i: (0, 0)),
                      pl.BlockSpec(slab.shape, lambda i: (0, 0))],
            out_specs=pl.BlockSpec((Bp, 128), lambda i: (0, 0)),
            compiler_params=pltpu.CompilerParams(
                dimension_semantics=("arbitrary",),
                vmem_limit_bytes=32 * 1024 * 1024),
        )(p1, slab)
        return out[:B, 0:1], out[:B, 1:2]

    return forward


# ------------------------------ pure-JAX reference -----------------------------

def reference_forward(x, p):
    """Straightforward (unfused) transcription of the PyTorch module in eval mode."""
    B, Cin, L = x.shape
    hi = jax.lax.Precision.HIGHEST

    def leaky(v):
        return jnp.where(v > 0, v, NEG_SLOPE * v)

    def conv_stage(inp_blc, w, b, ksz):           # inp (B, L, C); w rows ordered (c, k)
        Bb, Ll, Cc = inp_blc.shape
        pos = Ll // ksz
        patches = inp_blc.reshape(Bb, pos, ksz, Cc).transpose(0, 1, 3, 2).reshape(Bb, pos, Cc * ksz)
        return leaky(jnp.einsum("bpk,kn->bpn", patches, w, precision=hi) + b)

    f1 = conv_stage(jnp.transpose(x, (0, 2, 1)), p["conv1_w"], p["conv1_b"], 5)   # (B,200,32)
    f1 = jnp.maximum(f1[:, 0::2], f1[:, 1::2])                                    # (B,100,32)
    f2 = conv_stage(f1, p["conv2_w"], p["conv2_b"], 5)                            # (B,20,64)
    f2 = jnp.maximum(f2[:, 0::2], f2[:, 1::2])                                    # (B,10,64)
    f3 = conv_stage(f2, p["conv3_w"], p["conv3_b"], 2)                            # (B,5,128)
    feat = jnp.transpose(f3, (0, 2, 1)).reshape(B, 128 * 5)       # channel-major flatten

    a = leaky(jnp.dot(feat, p["arr_w0"], precision=hi) + p["arr_b0"])
    arrival = jnp.dot(a, p["arr_w1"], precision=hi) + p["arr_b1"]

    h = jnp.dot(feat, p["h_w0"], precision=hi) + p["h_b0"]
    for (w, b, relu_before) in p["h_tail"]:
        if relu_before:
            h = jnp.maximum(h, 0.0)
        h = jnp.dot(h, w, precision=hi) + b
    return arrival, h


# ------------------------------ main -------------------------------------------

if __name__ == "__main__":
    # L must be 1000 so the flattened conv feature is 128*5 = 640 (fixed by the module).
    B, Cin, L = 2, 4, 1000
    H_UNITS, H_LAYERS = 32, 2

    key = jax.random.PRNGKey(0)
    kx, kparam = jax.random.split(key)
    x = jax.random.normal(kx, (B, Cin, L), jnp.float32)

    params = init_params(kparam, Cin, H_UNITS, H_LAYERS)
    slab, layout = prepare_kernel_params(params, Cin, H_UNITS)
    forward = make_forward(layout)

    out_arrival, out_height = forward(x, slab)
    jax.block_until_ready((out_arrival, out_height))

    assert out_arrival.shape == (B, 1) and out_arrival.dtype == jnp.float32
    assert out_height.shape == (B, 1) and out_height.dtype == jnp.float32

    # Numerical check against the unfused pure-JAX reference of the PyTorch module.
    ref_arrival, ref_height = reference_forward(x, params)
    err = max(float(jnp.max(jnp.abs(out_arrival - ref_arrival))),
              float(jnp.max(jnp.abs(out_height - ref_height))))
    assert err < 5e-2, f"kernel/reference mismatch: max abs err = {err}"

    print("KERNEL_OK")
</pallas_src>

<mosaic_0001>
module attributes {stable_mosaic.version = 11 : i64} {
  func.func @_fused_forward_kernel(%arg0: i32, %arg1: memref<320x100xf32, #tpu.memory_space<vmem>>, %arg2: memref<1312x160xf32, #tpu.memory_space<vmem>>, %arg3: memref<8x128xf32, #tpu.memory_space<vmem>>) attributes {dimension_semantics = [#tpu.dimension_semantics<arbitrary>], iteration_bounds = array<i64: 1>, scalar_prefetch = 0 : i64, scratch_operands = 0 : i64, tpu.core_type = #tpu.core_type<tc>, window_params = [{pipeline_mode = #tpu.pipeline_mode<synchronous>, transform_indices = @transform_0, window_bounds = array<i64: 320, 100>}, {pipeline_mode = #tpu.pipeline_mode<synchronous>, transform_indices = @transform_1, window_bounds = array<i64: 1312, 160>}, {pipeline_mode = #tpu.pipeline_mode<synchronous>, transform_indices = @transform_2, window_bounds = array<i64: 8, 128>}]} {
    %c0 = arith.constant 0 : index
    %c0_0 = arith.constant 0 : index
    %0 = vector.load %arg1[%c0, %c0_0] : memref<320x100xf32, #tpu.memory_space<vmem>>, vector<320x100xf32>
    %c0_1 = arith.constant 0 : index
    %c0_2 = arith.constant 0 : index
    %1 = vector.load %arg2[%c0_1, %c0_2] : memref<1312x160xf32, #tpu.memory_space<vmem>>, vector<100x160xf32>
    %cst = arith.constant dense<0.000000e+00> : vector<320x160xf32>
    %2 = tpu.matmul %0, %1, %cst {dimension_numbers = #tpu.dot_dimension_numbers<[1], [0], [0], [1], [0, 0, 1, 1], [], []>} : vector<320x100xf32>, vector<100x160xf32>, vector<320x160xf32> -> vector<320x160xf32>
    %c104 = arith.constant 104 : index
    %c0_3 = arith.constant 0 : index
    %3 = vector.load %arg2[%c104, %c0_3] : memref<1312x160xf32, #tpu.memory_space<vmem>>, vector<1x160xf32>
    %4 = vector.broadcast %3 : vector<1x160xf32> to vector<320x160xf32>
    %5 = arith.addf %2, %4 : vector<320x160xf32>
    %cst_4 = arith.constant 0.00999999977 : f32
    %6 = vector.broadcast %cst_4 : f32 to vector<320x160xf32>
    %7 = arith.mulf %6, %5 : vector<320x160xf32>
    %8 = arith.maximumf %5, %7 : vector<320x160xf32>
    %9 = vector.extract_strided_slice %8 {offsets = [0, 0], sizes = [160, 160], strides = [1, 1]} : vector<320x160xf32> to vector<160x160xf32>
    %10 = vector.extract_strided_slice %8 {offsets = [160, 0], sizes = [160, 160], strides = [1, 1]} : vector<320x160xf32> to vector<160x160xf32>
    %11 = arith.maximumf %9, %10 : vector<160x160xf32>
    %c112 = arith.constant 112 : index
    %c0_5 = arith.constant 0 : index
    %12 = vector.load %arg2[%c112, %c0_5] : memref<1312x160xf32, #tpu.memory_space<vmem>>, vector<160x64xf32>
    %cst_6 = arith.constant dense<0.000000e+00> : vector<160x64xf32>
    %13 = tpu.matmul %11, %12, %cst_6 {dimension_numbers = #tpu.dot_dimension_numbers<[1], [0], [0], [1], [0, 0, 1, 1], [], []>} : vector<160x160xf32>, vector<160x64xf32>, vector<160x64xf32> -> vector<160x64xf32>
    %c272 = arith.constant 272 : index
    %c0_7 = arith.constant 0 : index
    %14 = vector.load %arg2[%c272, %c0_7] : memref<1312x160xf32, #tpu.memory_space<vmem>>, vector<1x64xf32>
    %15 = vector.broadcast %14 : vector<1x64xf32> to vector<160x64xf32>
    %16 = arith.addf %13, %15 : vector<160x64xf32>
    %cst_8 = arith.constant 0.00999999977 : f32
    %17 = vector.broadcast %cst_8 : f32 to vector<160x64xf32>
    %18 = arith.mulf %17, %16 : vector<160x64xf32>
    %19 = arith.maximumf %16, %18 : vector<160x64xf32>
    %20 = vector.extract_strided_slice %19 {offsets = [0, 0], sizes = [80, 64], strides = [1, 1]} : vector<160x64xf32> to vector<80x64xf32>
    %21 = vector.extract_strided_slice %19 {offsets = [80, 0], sizes = [80, 64], strides = [1, 1]} : vector<160x64xf32> to vector<80x64xf32>
    %22 = arith.maximumf %20, %21 : vector<80x64xf32>
    %c280 = arith.constant 280 : index
    %c0_9 = arith.constant 0 : index
    %23 = vector.load %arg2[%c280, %c0_9] : memref<1312x160xf32, #tpu.memory_space<vmem>>, vector<128x128xf32>
    %24 = vector.extract_strided_slice %22 {offsets = [0, 0], sizes = [40, 64], strides = [1, 1]} : vector<80x64xf32> to vector<40x64xf32>
    %25 = vector.extract_strided_slice %23 {offsets = [0, 0], sizes = [64, 128], strides = [1, 1]} : vector<128x128xf32> to vector<64x128xf32>
    %cst_10 = arith.constant dense<0.000000e+00> : vector<40x128xf32>
    %26 = tpu.matmul %24, %25, %cst_10 {dimension_numbers = #tpu.dot_dimension_numbers<[1], [0], [0], [1], [0, 0, 1, 1], [], []>} : vector<40x64xf32>, vector<64x128xf32>, vector<40x128xf32> -> vector<40x128xf32>
    %27 = vector.extract_strided_slice %22 {offsets = [40, 0], sizes = [40, 64], strides = [1, 1]} : vector<80x64xf32> to vector<40x64xf32>
    %28 = vector.extract_strided_slice %23 {offsets = [64, 0], sizes = [64, 128], strides = [1, 1]} : vector<128x128xf32> to vector<64x128xf32>
    %cst_11 = arith.constant dense<0.000000e+00> : vector<40x128xf32>
    %29 = tpu.matmul %27, %28, %cst_11 {dimension_numbers = #tpu.dot_dimension_numbers<[1], [0], [0], [1], [0, 0, 1, 1], [], []>} : vector<40x64xf32>, vector<64x128xf32>, vector<40x128xf32> -> vector<40x128xf32>
    %30 = arith.addf %26, %29 : vector<40x128xf32>
    %c408 = arith.constant 408 : index
    %c0_12 = arith.constant 0 : index
    %31 = vector.load %arg2[%c408, %c0_12] : memref<1312x160xf32, #tpu.memory_space<vmem>>, vector<1x128xf32>
    %32 = vector.broadcast %31 : vector<1x128xf32> to vector<40x128xf32>
    %33 = arith.addf %30, %32 : vector<40x128xf32>
    %cst_13 = arith.constant 0.00999999977 : f32
    %34 = vector.broadcast %cst_13 : f32 to vector<40x128xf32>
    %35 = arith.mulf %34, %33 : vector<40x128xf32>
    %36 = arith.maximumf %33, %35 : vector<40x128xf32>
    %c416 = arith.constant 416 : index
    %c0_14 = arith.constant 0 : index
    %37 = vector.load %arg2[%c416, %c0_14] : memref<1312x160xf32, #tpu.memory_space<vmem>>, vector<640x160xf32>
    %c1056 = arith.constant 1056 : index
    %c0_15 = arith.constant 0 : index
    %38 = vector.load %arg2[%c1056, %c0_15] : memref<1312x160xf32, #tpu.memory_space<vmem>>, vector<1x160xf32>
    %39 = vector.extract_strided_slice %36 {offsets = [0, 0], sizes = [8, 128], strides = [1, 1]} : vector<40x128xf32> to vector<8x128xf32>
    %40 = vector.extract_strided_slice %37 {offsets = [0, 0], sizes = [128, 160], strides = [1, 1]} : vector<640x160xf32> to vector<128x160xf32>
    %cst_16 = arith.constant dense<0.000000e+00> : vector<8x160xf32>
    %41 = tpu.matmul %39, %40, %cst_16 {dimension_numbers = #tpu.dot_dimension_numbers<[1], [0], [0], [1], [0, 0, 1, 1], [], []>} : vector<8x128xf32>, vector<128x160xf32>, vector<8x160xf32> -> vector<8x160xf32>
    %42 = vector.broadcast %38 : vector<1x160xf32> to vector<8x160xf32>
    %43 = arith.addf %42, %41 : vector<8x160xf32>
    %44 = vector.extract_strided_slice %36 {offsets = [8, 0], sizes = [8, 128], strides = [1, 1]} : vector<40x128xf32> to vector<8x128xf32>
    %45 = vector.extract_strided_slice %37 {offsets = [128, 0], sizes = [128, 160], strides = [1, 1]} : vector<640x160xf32> to vector<128x160xf32>
    %cst_17 = arith.constant dense<0.000000e+00> : vector<8x160xf32>
    %46 = tpu.matmul %44, %45, %cst_17 {dimension_numbers = #tpu.dot_dimension_numbers<[1], [0], [0], [1], [0, 0, 1, 1], [], []>} : vector<8x128xf32>, vector<128x160xf32>, vector<8x160xf32> -> vector<8x160xf32>
    %47 = arith.addf %43, %46 : vector<8x160xf32>
    %48 = vector.extract_strided_slice %36 {offsets = [16, 0], sizes = [8, 128], strides = [1, 1]} : vector<40x128xf32> to vector<8x128xf32>
    %49 = vector.extract_strided_slice %37 {offsets = [256, 0], sizes = [128, 160], strides = [1, 1]} : vector<640x160xf32> to vector<128x160xf32>
    %cst_18 = arith.constant dense<0.000000e+00> : vector<8x160xf32>
    %50 = tpu.matmul %48, %49, %cst_18 {dimension_numbers = #tpu.dot_dimension_numbers<[1], [0], [0], [1], [0, 0, 1, 1], [], []>} : vector<8x128xf32>, vector<128x160xf32>, vector<8x160xf32> -> vector<8x160xf32>
    %51 = arith.addf %47, %50 : vector<8x160xf32>
    %52 = vector.extract_strided_slice %36 {offsets = [24, 0], sizes = [8, 128], strides = [1, 1]} : vector<40x128xf32> to vector<8x128xf32>
    %53 = vector.extract_strided_slice %37 {offsets = [384, 0], sizes = [128, 160], strides = [1, 1]} : vector<640x160xf32> to vector<128x160xf32>
    %cst_19 = arith.constant dense<0.000000e+00> : vector<8x160xf32>
    %54 = tpu.matmul %52, %53, %cst_19 {dimension_numbers = #tpu.dot_dimension_numbers<[1], [0], [0], [1], [0, 0, 1, 1], [], []>} : vector<8x128xf32>, vector<128x160xf32>, vector<8x160xf32> -> vector<8x160xf32>
    %55 = arith.addf %51, %54 : vector<8x160xf32>
    %56 = vector.extract_strided_slice %36 {offsets = [32, 0], sizes = [8, 128], strides = [1, 1]} : vector<40x128xf32> to vector<8x128xf32>
    %57 = vector.extract_strided_slice %37 {offsets = [512, 0], sizes = [128, 160], strides = [1, 1]} : vector<640x160xf32> to vector<128x160xf32>
    %cst_20 = arith.constant dense<0.000000e+00> : vector<8x160xf32>
    %58 = tpu.matmul %56, %57, %cst_20 {dimension_numbers = #tpu.dot_dimension_numbers<[1], [0], [0], [1], [0, 0, 1, 1], [], []>} : vector<8x128xf32>, vector<128x160xf32>, vector<8x160xf32> -> vector<8x160xf32>
    %59 = arith.addf %55, %58 : vector<8x160xf32>
    %60 = vector.extract_strided_slice %59 {offsets = [0, 0], sizes = [8, 128], strides = [1, 1]} : vector<8x160xf32> to vector<8x128xf32>
    %cst_21 = arith.constant 0.00999999977 : f32
    %61 = vector.broadcast %cst_21 : f32 to vector<8x128xf32>
    %62 = arith.mulf %61, %60 : vector<8x128xf32>
    %63 = arith.maximumf %60, %62 : vector<8x128xf32>
    %64 = vector.extract_strided_slice %59 {offsets = [0, 128], sizes = [8, 32], strides = [1, 1]} : vector<8x160xf32> to vector<8x32xf32>
    %c1064 = arith.constant 1064 : index
    %c0_22 = arith.constant 0 : index
    %65 = vector.load %arg2[%c1064, %c0_22] : memref<1312x160xf32, #tpu.memory_space<vmem>>, vector<32x32xf32>
    %cst_23 = arith.constant dense<0.000000e+00> : vector<8x32xf32>
    %66 = tpu.matmul %64, %65, %cst_23 {dimension_numbers = #tpu.dot_dimension_numbers<[1], [0], [0], [1], [0, 0, 1, 1], [], []>} : vector<8x32xf32>, vector<32x32xf32>, vector<8x32xf32> -> vector<8x32xf32>
    %c1096 = arith.constant 1096 : index
    %c0_24 = arith.constant 0 : index
    %67 = vector.load %arg2[%c1096, %c0_24] : memref<1312x160xf32, #tpu.memory_space<vmem>>, vector<1x32xf32>
    %68 = vector.broadcast %67 : vector<1x32xf32> to vector<8x32xf32>
    %69 = arith.addf %66, %68 : vector<8x32xf32>
    %cst_25 = arith.constant 0.000000e+00 : f32
    %70 = vector.broadcast %cst_25 : f32 to vector<8x32xf32>
    %71 = arith.maximumf %69, %70 : vector<8x32xf32>
    %c1104 = arith.constant 1104 : index
    %c0_26 = arith.constant 0 : index
    %72 = vector.load %arg2[%c1104, %c0_26] : memref<1312x160xf32, #tpu.memory_space<vmem>>, vector<32x32xf32>
    %cst_27 = arith.constant dense<0.000000e+00> : vector<8x32xf32>
    %73 = tpu.matmul %71, %72, %cst_27 {dimension_numbers = #tpu.dot_dimension_numbers<[1], [0], [0], [1], [0, 0, 1, 1], [], []>} : vector<8x32xf32>, vector<32x32xf32>, vector<8x32xf32> -> vector<8x32xf32>
    %c1136 = arith.constant 1136 : index
    %c0_28 = arith.constant 0 : index
    %74 = vector.load %arg2[%c1136, %c0_28] : memref<1312x160xf32, #tpu.memory_space<vmem>>, vector<1x32xf32>
    %75 = vector.broadcast %74 : vector<1x32xf32> to vector<8x32xf32>
    %76 = arith.addf %73, %75 : vector<8x32xf32>
    %c1144 = arith.constant 1144 : index
    %c0_29 = arith.constant 0 : index
    %77 = vector.load %arg2[%c1144, %c0_29] : memref<1312x160xf32, #tpu.memory_space<vmem>>, vector<128x128xf32>
    %cst_30 = arith.constant dense<0.000000e+00> : vector<8x128xf32>
    %78 = tpu.matmul %63, %77, %cst_30 {dimension_numbers = #tpu.dot_dimension_numbers<[1], [0], [0], [1], [0, 0, 1, 1], [], []>} : vector<8x128xf32>, vector<128x128xf32>, vector<8x128xf32> -> vector<8x128xf32>
    %c1272 = arith.constant 1272 : index
    %c0_31 = arith.constant 0 : index
    %79 = vector.load %arg2[%c1272, %c0_31] : memref<1312x160xf32, #tpu.memory_space<vmem>>, vector<32x128xf32>
    %cst_32 = arith.constant dense<0.000000e+00> : vector<8x128xf32>
    %80 = tpu.matmul %76, %79, %cst_32 {dimension_numbers = #tpu.dot_dimension_numbers<[1], [0], [0], [1], [0, 0, 1, 1], [], []>} : vector<8x32xf32>, vector<32x128xf32>, vector<8x128xf32> -> vector<8x128xf32>
    %81 = arith.addf %78, %80 : vector<8x128xf32>
    %c1304 = arith.constant 1304 : index
    %c0_33 = arith.constant 0 : index
    %82 = vector.load %arg2[%c1304, %c0_33] : memref<1312x160xf32, #tpu.memory_space<vmem>>, vector<1x128xf32>
    %83 = vector.broadcast %82 : vector<1x128xf32> to vector<8x128xf32>
    %84 = arith.addf %81, %83 : vector<8x128xf32>
    %c0_34 = arith.constant 0 : index
    %c0_35 = arith.constant 0 : index
    %85 = vector.load %arg3[%c0_34, %c0_35] : memref<8x128xf32, #tpu.memory_space<vmem>>, vector<8x128xf32>
    tpu.vector_store %arg3[%c0_34, %c0_35], %84 {strides = array<i32>} : memref<8x128xf32, #tpu.memory_space<vmem>>, vector<8x128xf32>,
    return
  }
  func.func @transform_0(%arg0: i32) -> (i32, i32) {
    %c0_i32 = arith.constant 0 : i32
    %c0_i32_0 = arith.constant 0 : i32
    %c0_i32_1 = arith.constant 0 : i32
    return %c0_i32, %c0_i32_0 : i32, i32
  }
  func.func @transform_1(%arg0: i32) -> (i32, i32) {
    %c0_i32 = arith.constant 0 : i32
    %c0_i32_0 = arith.constant 0 : i32
    %c0_i32_1 = arith.constant 0 : i32
    return %c0_i32, %c0_i32_0 : i32, i32
  }
  func.func @transform_2(%arg0: i32) -> (i32, i32) {
    %c0_i32 = arith.constant 0 : i32
    %c0_i32_0 = arith.constant 0 : i32
    %c0_i32_1 = arith.constant 0 : i32
    return %c0_i32, %c0_i32_0 : i32, i32
  }
}

</mosaic_0001>

<bundles_post_ra>
// kernel: forward.1
= control target key start
LH: loop header
LB: loop body
LE: loop exit
PB: predicated region body
PF: predicated region fallthrough
CT: control target
= control target key end

     0   :  { %vm205_vm0 = vcmask 1043456   ;;  %vm84_vm1 = vcmask 818176   ;;  %vm707_vm2 = vcmask 261120   ;;  %vm988_vm3 = vcmask 523264   ;;  %s3041_s1 = inlined_call_operand.vmem [shape: f32[1312,160], index: 1, kind: input, shape index: {}]   ;;  %s3042_s0 = inlined_call_operand.vmem [shape: f32[320,100], index: 0, kind: input, shape index: {}]   ;;  %s3043_s2 = inlined_call_operand.vmem [shape: f32[8,128], index: 2, kind: output, shape index: {}]  }
   0x1   :  { %v75_v0 = vld [vmem:[%s3041_s1 + $0xc0] sm:$0xf]  ;;  %v76_v1 = vld [vmem:[%s3041_s1 + $0xc8] sm:$0xf]  ;;  %v73_v2 = vld [vmem:[%s3041_s1 + $0xb0] sm:$0xff] }
   0x2   :  { %1606 = vmatpush.msk.msra.mxu0 %vm205_vm0, %v75_v0  ;;  %1647 = vmatpush.msk.msra.mxu1 %vm205_vm0, %v76_v1  ;;  %v74_v3 = vld [vmem:[%s3041_s1 + $0xb8] sm:$0xff]  ;;  %v71_v4 = vld [vmem:[%s3041_s1 + $0xa0] sm:$0xff]  ;;  %v72_v5 = vld [vmem:[%s3041_s1 + $0xa8] sm:$0xff] }
   0x3   :  { %v69_v6 = vld [vmem:[%s3041_s1 + $0x90] sm:$0xff]  ;;  %v70_v7 = vld [vmem:[%s3041_s1 + $0x98] sm:$0xff]  ;;  %v67_v8 = vld [vmem:[%s3041_s1 + $0x80] sm:$0xff] }
   0x4   :  { %216 = vmatpush.msra.mxu0 %v73_v2  ;;  %353 = vmatpush.msra.mxu1 %v74_v3  ;;  %v68_v9 = vld [vmem:[%s3041_s1 + $0x88] sm:$0xff]  ;;  %v65_v10 = vld [vmem:[%s3041_s1 + $0x70] sm:$0xff]  ;;  %v66_v11 = vld [vmem:[%s3041_s1 + $0x78] sm:$0xff] }
   0x5   :  { %v63_v12 = vld [vmem:[%s3041_s1 + $0x60] sm:$0xff]  ;;  %v64_v13 = vld [vmem:[%s3041_s1 + $0x68] sm:$0xff]  ;;  %v61_v14 = vld [vmem:[%s3041_s1 + $0x50] sm:$0xff] }
   0x6   :  { %217 = vmatpush.msra.mxu0 %v71_v4  ;;  %354 = vmatpush.msra.mxu1 %v72_v5  ;;  %v62_v15 = vld [vmem:[%s3041_s1 + $0x58] sm:$0xff]  ;;  %v59_v16 = vld [vmem:[%s3041_s1 + $0x40] sm:$0xff]  ;;  %v60_v17 = vld [vmem:[%s3041_s1 + $0x48] sm:$0xff] }
   0x7   :  { %v57_v18 = vld [vmem:[%s3041_s1 + $0x30] sm:$0xff]  ;;  %v58_v19 = vld [vmem:[%s3041_s1 + $0x38] sm:$0xff]  ;;  %v55_v20 = vld [vmem:[%s3041_s1 + $0x20] sm:$0xff] }
   0x8   :  { %218 = vmatpush.msra.mxu0 %v69_v6  ;;  %355 = vmatpush.msra.mxu1 %v70_v7  ;;  %v56_v21 = vld [vmem:[%s3041_s1 + $0x28] sm:$0xff]  ;;  %v53_v22 = vld [vmem:[%s3041_s1 + $0x10] sm:$0xff]  ;;  %v54_v23 = vld [vmem:[%s3041_s1 + $0x18] sm:$0xff] }
   0x9   :  { %v51_v24 = vld [vmem:[%s3041_s1] sm:$0xff]  ;;  %v52_v25 = vld [vmem:[%s3041_s1 + $0x8] sm:$0xff]  ;;  %v13_v28 = vld [vmem:[%s3042_s0 + $0x10] sm:$0xff] }
   0xa   :  { %219 = vmatpush.msra.mxu0 %v67_v8  ;;  %356 = vmatpush.msra.mxu1 %v68_v9  ;;  %v11_v26 = vld [vmem:[%s3042_s0] sm:$0xff]  ;;  %v12_v27 = vld [vmem:[%s3042_s0 + $0x8] sm:$0xff]  ;;  %v14_v29 = vld [vmem:[%s3042_s0 + $0x18] sm:$0xff] }
   0xb   :  { %v15_v30 = vld [vmem:[%s3042_s0 + $0x20] sm:$0xff]  ;;  %v16_v31 = vld [vmem:[%s3042_s0 + $0x28] sm:$0xff]  ;;  %v17_v32 = vld [vmem:[%s3042_s0 + $0x30] sm:$0xff] }
   0xc   :  { %220 = vmatpush.msra.mxu0 %v65_v10  ;;  %357 = vmatpush.msra.mxu1 %v66_v11  ;;  %v18_v33 = vld [vmem:[%s3042_s0 + $0x38] sm:$0xff]  ;;  %v19_v34 = vld [vmem:[%s3042_s0 + $0x40] sm:$0xff]  ;;  %v20_v35 = vld [vmem:[%s3042_s0 + $0x48] sm:$0xff] }
   0xd   :  { %v21_v36 = vld [vmem:[%s3042_s0 + $0x50] sm:$0xff]  ;;  %v22_v37 = vld [vmem:[%s3042_s0 + $0x58] sm:$0xff]  ;;  %v23_v38 = vld [vmem:[%s3042_s0 + $0x60] sm:$0xff] }
   0xe   :  { %221 = vmatpush.msra.mxu0 %v63_v12  ;;  %358 = vmatpush.msra.mxu1 %v64_v13  ;;  %v24_v39 = vld [vmem:[%s3042_s0 + $0x68] sm:$0xff]  ;;  %v25_v40 = vld [vmem:[%s3042_s0 + $0x70] sm:$0xff]  ;;  %v26_v41 = vld [vmem:[%s3042_s0 + $0x78] sm:$0xff] }
   0xf   :  { %v27_v44 = vld [vmem:[%s3042_s0 + $0x80] sm:$0xff]  ;;  %v28_v47 = vld [vmem:[%s3042_s0 + $0x88] sm:$0xff]  ;;  %v29_v50 = vld [vmem:[%s3042_s0 + $0x90] sm:$0xff] }
  0x10   :  { %222 = vmatpush.msra.mxu0 %v61_v14  ;;  %359 = vmatpush.msra.mxu1 %v62_v15  ;;  %v30_v53 = vld [vmem:[%s3042_s0 + $0x98] sm:$0xff]  ;;  %v31_v56 = vld [vmem:[%s3042_s0 + $0xa0] sm:$0xff]  ;;  %v32_v59 = vld [vmem:[%s3042_s0 + $0xa8] sm:$0xff] }
  0x11   :  { %v33_v62 = vld [vmem:[%s3042_s0 + $0xb0] sm:$0xff]  ;;  %v34_v1 = vld [vmem:[%s3042_s0 + $0xb8] sm:$0xff]  ;;  %v35_v4 = vld [vmem:[%s3042_s0 + $0xc0] sm:$0xff] }
  0x12   :  { %223 = vmatpush.msra.mxu0 %v59_v16  ;;  %360 = vmatpush.msra.mxu1 %v60_v17  ;;  %v36_v7 = vld [vmem:[%s3042_s0 + $0xc8] sm:$0xff]  ;;  %v37_v10 = vld [vmem:[%s3042_s0 + $0xd0] sm:$0xff]  ;;  %v38_v13 = vld [vmem:[%s3042_s0 + $0xd8] sm:$0xff] }
  0x13   :  { %v39_v16 = vld [vmem:[%s3042_s0 + $0xe0] sm:$0xff] }
  0x14   :  { %224 = vmatpush.msra.mxu0 %v57_v18  ;;  %361 = vmatpush.msra.mxu1 %v58_v19  ;;  %v40_v19 = vld [vmem:[%s3042_s0 + $0xe8] sm:$0xff] }
  0x16   :  { %225 = vmatpush.msra.mxu0 %v55_v20  ;;  %362 = vmatpush.msra.mxu1 %v56_v21  ;;  %v701_v20 = vld [vmem:[%s3041_s1 + $0x1d0] sm:$0xff]  ;;  %v700_v21 = vld [vmem:[%s3041_s1 + $0x1c0] sm:$0xff] }
  0x17   :  { %768 = vmatpush.msra.mxu2 %v701_v20 }
  0x18   :  { %226 = vmatpush.msra.mxu0 %v53_v22  ;;  %363 = vmatpush.msra.mxu1 %v54_v23  ;;  %v699_v22 = vld [vmem:[%s3041_s1 + $0x1b0] sm:$0xff]  ;;  %v698_v23 = vld [vmem:[%s3041_s1 + $0x1a0] sm:$0xff] }
  0x19   :  { %769 = vmatpush.msra.mxu2 %v700_v21 }
  0x1a   :  { %227 = vmatpush.msra.mxu0 %v51_v24  ;;  %364 = vmatpush.msra.mxu1 %v52_v25 }
  0x1b   :  { %1607 = vmatmul.msk.f32.vlgmr.msra.gmra.mxu0 %vm84_vm1, %v11_v26  ;;  %1648 = vmatmul.msk.f32.vlgmr.msra.gmra.mxu1 %vm84_vm1, %v11_v26  ;;  %v41_v26 = vld [vmem:[%s3042_s0 + $0xf0] sm:$0xff] }
  0x1c   :  { %770 = vmatpush.msra.mxu2 %v699_v22 }
  0x1e   :  { %771 = vmatpush.msra.mxu2 %v698_v23 }
  0x23   :  { %1608 = vmatmul.msk.f32.gmra.mxu0 %vm84_vm1, %v12_v27  ;;  %1649 = vmatmul.msk.f32.gmra.mxu1 %vm84_vm1, %v12_v27  ;;  %v697_v27 = vld [vmem:[%s3041_s1 + $0x190] sm:$0xff] }
  0x24   :  { %772 = vmatpush.msra.mxu2 %v697_v27 }
  0x2b   :  { %1609 = vmatmul.msk.f32.gmra.mxu0 %vm84_vm1, %v13_v28  ;;  %1650 = vmatmul.msk.f32.gmra.mxu1 %vm84_vm1, %v13_v28  ;;  %v696_v28 = vld [vmem:[%s3041_s1 + $0x180] sm:$0xff] }
  0x2c   :  { %773 = vmatpush.msra.mxu2 %v696_v28 }
  0x33   :  { %1610 = vmatmul.msk.f32.gmra.mxu0 %vm84_vm1, %v14_v29  ;;  %1651 = vmatmul.msk.f32.gmra.mxu1 %vm84_vm1, %v14_v29  ;;  %v695_v29 = vld [vmem:[%s3041_s1 + $0x170] sm:$0xff] }
  0x34   :  { %774 = vmatpush.msra.mxu2 %v695_v29 }
  0x3b   :  { %1611 = vmatmul.msk.f32.gmra.mxu0 %vm84_vm1, %v15_v30  ;;  %1652 = vmatmul.msk.f32.gmra.mxu1 %vm84_vm1, %v15_v30  ;;  %v694_v30 = vld [vmem:[%s3041_s1 + $0x160] sm:$0xff] }
  0x3c   :  { %775 = vmatpush.msra.mxu2 %v694_v30 }
  0x43   :  { %1612 = vmatmul.msk.f32.gmra.mxu0 %vm84_vm1, %v16_v31  ;;  %1653 = vmatmul.msk.f32.gmra.mxu1 %vm84_vm1, %v16_v31 }
  0x4b   :  { %1613 = vmatmul.msk.f32.gmra.mxu0 %vm84_vm1, %v17_v32  ;;  %1654 = vmatmul.msk.f32.gmra.mxu1 %vm84_vm1, %v17_v32 }
  0x53   :  { %1614 = vmatmul.msk.f32.gmra.mxu0 %vm84_vm1, %v18_v33  ;;  %1655 = vmatmul.msk.f32.gmra.mxu1 %vm84_vm1, %v18_v33  ;;  %v42_v33 = vld [vmem:[%s3042_s0 + $0xf8] sm:$0xff] }
  0x5b   :  { %1615 = vmatmul.msk.f32.gmra.mxu0 %vm84_vm1, %v19_v34  ;;  %1656 = vmatmul.msk.f32.gmra.mxu1 %vm84_vm1, %v19_v34  ;;  %v693_v34 = vld [vmem:[%s3041_s1 + $0x150] sm:$0xff] }
  0x5c   :  { %776 = vmatpush.msra.mxu2 %v693_v34 }
  0x63   :  { %1616 = vmatmul.msk.f32.gmra.mxu0 %vm84_vm1, %v20_v35  ;;  %1657 = vmatmul.msk.f32.gmra.mxu1 %vm84_vm1, %v20_v35  ;;  %v692_v35 = vld [vmem:[%s3041_s1 + $0x140] sm:$0xff] }
  0x64   :  { %777 = vmatpush.msra.mxu2 %v692_v35  ;;  %v47_v35 = vld [vmem:[%s3042_s0 + $0x120] sm:$0xff] }
  0x6b   :  { %1617 = vmatmul.msk.f32.gmra.mxu0 %vm84_vm1, %v21_v36  ;;  %1658 = vmatmul.msk.f32.gmra.mxu1 %vm84_vm1, %v21_v36  ;;  %v691_v36 = vld [vmem:[%s3041_s1 + $0x130] sm:$0xff] }
  0x6c   :  { %778 = vmatpush.msra.mxu2 %v691_v36 }
  0x73   :  { %1618 = vmatmul.msk.f32.gmra.mxu0 %vm84_vm1, %v22_v37  ;;  %1659 = vmatmul.msk.f32.gmra.mxu1 %vm84_vm1, %v22_v37  ;;  %v690_v37 = vld [vmem:[%s3041_s1 + $0x120] sm:$0xff] }
  0x74   :  { %779 = vmatpush.msra.mxu2 %v690_v37 }
  0x7b   :  { %1619 = vmatmul.msk.f32.gmra.mxu0 %vm84_vm1, %v23_v38  ;;  %1660 = vmatmul.msk.f32.gmra.mxu1 %vm84_vm1, %v23_v38 }
  0x83   :  { %1620 = vmatmul.msk.f32.gmra.mxu0 %vm84_vm1, %v24_v39  ;;  %1661 = vmatmul.msk.f32.gmra.mxu1 %vm84_vm1, %v24_v39 }
  0x8b   :  { %1621 = vmatmul.msk.f32.gmra.mxu0 %vm84_vm1, %v25_v40  ;;  %1662 = vmatmul.msk.f32.gmra.mxu1 %vm84_vm1, %v25_v40  ;;  %v43_v40 = vld [vmem:[%s3042_s0 + $0x100] sm:$0xff] }
  0x93   :  { %1622 = vmatmul.msk.f32.gmra.mxu0 %vm84_vm1, %v26_v41  ;;  %1663 = vmatmul.msk.f32.gmra.mxu1 %vm84_vm1, %v26_v41  ;;  %v689_v41 = vld [vmem:[%s3041_s1 + $0x110] sm:$0xff] }
  0x94   :  { %780 = vmatpush.msra.mxu2 %v689_v41 }
  0x98   :  { %v1895_v42 = vpop.f32.mrf.mxu0  ;;  %v1897_v43 = vpop.f32.mrf.mxu1 }
  0x9b   :  { %1623 = vmatmul.msk.f32.gmra.mxu0 %vm84_vm1, %v27_v44  ;;  %1664 = vmatmul.msk.f32.gmra.mxu1 %vm84_vm1, %v27_v44  ;;  %v705_v44 = vld [vmem:[%s3041_s1 + $0x210] sm:$0xff] }
  0x9c   :  { %857 = vmatpush.msra.mxu3 %v705_v44 }
  0xa0   :  { %v1904_v45 = vpop.f32.mrf.mxu0  ;;  %v1906_v46 = vpop.f32.mrf.mxu1 }
  0xa3   :  { %1624 = vmatmul.msk.f32.gmra.mxu0 %vm84_vm1, %v28_v47  ;;  %1665 = vmatmul.msk.f32.gmra.mxu1 %vm84_vm1, %v28_v47  ;;  %v688_v47 = vld [vmem:[%s3041_s1 + $0x100] sm:$0xff] }
  0xa4   :  { %781 = vmatpush.msra.mxu2 %v688_v47 }
  0xa8   :  { %v1913_v48 = vpop.f32.mrf.mxu0  ;;  %v1915_v49 = vpop.f32.mrf.mxu1 }
  0xab   :  { %1625 = vmatmul.msk.f32.gmra.mxu0 %vm84_vm1, %v29_v50  ;;  %1666 = vmatmul.msk.f32.gmra.mxu1 %vm84_vm1, %v29_v50  ;;  %v704_v50 = vld [vmem:[%s3041_s1 + $0x200] sm:$0xff] }
  0xac   :  { %858 = vmatpush.msra.mxu3 %v704_v50 }
  0xb0   :  { %v1922_v51 = vpop.f32.mrf.mxu0  ;;  %v1924_v52 = vpop.f32.mrf.mxu1 }
  0xb3   :  { %1626 = vmatmul.msk.f32.gmra.mxu0 %vm84_vm1, %v30_v53  ;;  %1667 = vmatmul.msk.f32.gmra.mxu1 %vm84_vm1, %v30_v53  ;;  %v687_v53 = vld [vmem:[%s3041_s1 + $0xf0] sm:$0xff] }
  0xb4   :  { %782 = vmatpush.msra.mxu2 %v687_v53 }
  0xb8   :  { %v1931_v54 = vpop.f32.mrf.mxu0  ;;  %v1933_v55 = vpop.f32.mrf.mxu1 }
  0xbb   :  { %1627 = vmatmul.msk.f32.gmra.mxu0 %vm84_vm1, %v31_v56  ;;  %1668 = vmatmul.msk.f32.gmra.mxu1 %vm84_vm1, %v31_v56  ;;  %v703_v56 = vld [vmem:[%s3041_s1 + $0x1f0] sm:$0xff] }
  0xbc   :  { %859 = vmatpush.msra.mxu3 %v703_v56 }
  0xc0   :  { %v1940_v57 = vpop.f32.mrf.mxu0  ;;  %v1942_v58 = vpop.f32.mrf.mxu1 }
  0xc3   :  { %1628 = vmatmul.msk.f32.gmra.mxu0 %vm84_vm1, %v32_v59  ;;  %1669 = vmatmul.msk.f32.gmra.mxu1 %vm84_vm1, %v32_v59  ;;  %v686_v59 = vld [vmem:[%s3041_s1 + $0xe0] sm:$0xff] }
  0xc4   :  { %783 = vmatpush.msra.mxu2 %v686_v59 }
  0xc8   :  { %v1949_v60 = vpop.f32.mrf.mxu0  ;;  %v1951_v61 = vpop.f32.mrf.mxu1 }
  0xcb   :  { %1629 = vmatmul.msk.f32.gmra.mxu0 %vm84_vm1, %v33_v62  ;;  %1670 = vmatmul.msk.f32.gmra.mxu1 %vm84_vm1, %v33_v62  ;;  %v702_v62 = vld [vmem:[%s3041_s1 + $0x1e0] sm:$0xff] }
  0xcc   :  { %860 = vmatpush.msra.mxu3 %v702_v62 }
  0xd0   :  { %v1958_v63 = vpop.f32.mrf.mxu0  ;;  %v1960_v0 = vpop.f32.mrf.mxu1 }
  0xd3   :  { %1630 = vmatmul.msk.f32.gmra.mxu0 %vm84_vm1, %v34_v1  ;;  %1671 = vmatmul.msk.f32.gmra.mxu1 %vm84_vm1, %v34_v1 }
  0xd8   :  { %v1967_v2 = vpop.f32.mrf.mxu0  ;;  %v1969_v3 = vpop.f32.mrf.mxu1 }
  0xdb   :  { %1631 = vmatmul.msk.f32.gmra.mxu0 %vm84_vm1, %v35_v4  ;;  %1672 = vmatmul.msk.f32.gmra.mxu1 %vm84_vm1, %v35_v4 }
  0xe0   :  { %v1976_v5 = vpop.f32.mrf.mxu0  ;;  %v1978_v6 = vpop.f32.mrf.mxu1 }
  0xe3   :  { %1632 = vmatmul.msk.f32.gmra.mxu0 %vm84_vm1, %v36_v7  ;;  %1673 = vmatmul.msk.f32.gmra.mxu1 %vm84_vm1, %v36_v7  ;;  %v44_v7 = vld [vmem:[%s3042_s0 + $0x108] sm:$0xff] }
  0xe8   :  { %v1985_v8 = vpop.f32.mrf.mxu0  ;;  %v1987_v9 = vpop.f32.mrf.mxu1 }
  0xeb   :  { %1633 = vmatmul.msk.f32.gmra.mxu0 %vm84_vm1, %v37_v10  ;;  %1674 = vmatmul.msk.f32.gmra.mxu1 %vm84_vm1, %v37_v10 }
  0xf0   :  { %v1994_v11 = vpop.f32.mrf.mxu0  ;;  %v1996_v12 = vpop.f32.mrf.mxu1 }
  0xf3   :  { %1634 = vmatmul.msk.f32.gmra.mxu0 %vm84_vm1, %v38_v13  ;;  %1675 = vmatmul.msk.f32.gmra.mxu1 %vm84_vm1, %v38_v13 }
  0xf8   :  { %v2003_v14 = vpop.f32.mrf.mxu0  ;;  %v2005_v15 = vpop.f32.mrf.mxu1 }
  0xfb   :  { %1635 = vmatmul.msk.f32.gmra.mxu0 %vm84_vm1, %v39_v16  ;;  %1676 = vmatmul.msk.f32.gmra.mxu1 %vm84_vm1, %v39_v16  ;;  %v45_v16 = vld [vmem:[%s3042_s0 + $0x110] sm:$0xff] }
 0x100   :  { %v2012_v17 = vpop.f32.mrf.mxu0  ;;  %v2014_v18 = vpop.f32.mrf.mxu1 }
 0x103   :  { %1636 = vmatmul.msk.f32.gmra.mxu0 %vm84_vm1, %v40_v19  ;;  %1677 = vmatmul.msk.f32.gmra.mxu1 %vm84_vm1, %v40_v19  ;;  %v1605_v19 = vld [vmem:[%s3041_s1 + $0xd0] ss:$8 sm:$0x3] }
 0x104   :  { %v2129_v20 = vperm.slane %v1605_v19, 0  ;;  %v2131_v21 = vperm.slane %v1605_v19, 1 }
 0x106   :  { %v230_v27 = vadd.f32 %v1895_v42, %v2129_v20  ;;  %v367_v28 = vadd.f32 %v1897_v43, %v2131_v21  ;;  %v233_v44 = vadd.f32 %v1904_v45, %v2129_v20  ;;  %v370_v47 = vadd.f32 %v1906_v46, %v2131_v21 }
 0x108   :  { %v2033_v24 = vpop.f32.mrf.mxu0  ;;  %v2035_v25 = vpop.f32.mrf.mxu1  ;;  %v486_v29 = vmul.f32 0.01, %v230_v27  ;;  %v487_v30 = vmul.f32 0.01, %v367_v28  ;;  %v488_v19 = vmul.f32 0.01, %v233_v44 }
 0x10a   :  { %v567_v42 = vmax.f32 %v367_v28, %v487_v30  ;;  %v566_v43 = vmax.f32 %v230_v27, %v486_v29  ;;  %v236_v29 = vadd.f32 %v1913_v48, %v2129_v20  ;;  %v373_v30 = vadd.f32 %v1915_v49, %v2131_v21 }
 0x10b   :  { %1637 = vmatmul.msk.f32.gmra.mxu0 %vm84_vm1, %v41_v26  ;;  %1678 = vmatmul.msk.f32.gmra.mxu1 %vm84_vm1, %v41_v26  ;;  %v46_v26 = vld [vmem:[%s3042_s0 + $0x118] sm:$0xff] }
 0x110   :  { %v2054_v31 = vpop.f32.mrf.mxu0  ;;  %v2056_v32 = vpop.f32.mrf.mxu1 }
 0x113   :  { %1638 = vmatmul.msk.f32.gmra.mxu0 %vm84_vm1, %v42_v33  ;;  %1679 = vmatmul.msk.f32.gmra.mxu1 %vm84_vm1, %v42_v33 }
 0x118   :  { %v2075_v38 = vpop.f32.mrf.mxu0  ;;  %v2077_v39 = vpop.f32.mrf.mxu1 }
 0x11b   :  { %1639 = vmatmul.msk.f32.gmra.mxu0 %vm84_vm1, %v43_v40  ;;  %1680 = vmatmul.msk.f32.gmra.mxu1 %vm84_vm1, %v43_v40 }
 0x120   :  { %v2108_v1 = vpop.f32.mrf.mxu0  ;;  %v2110_v4 = vpop.f32.mrf.mxu1 }
 0x123   :  { %1640 = vmatmul.msk.f32.gmra.mxu0 %vm84_vm1, %v44_v7  ;;  %1681 = vmatmul.msk.f32.gmra.mxu1 %vm84_vm1, %v44_v7 }
 0x128   :  { %v2117_v10 = vpop.f32.mrf.mxu0  ;;  %v2119_v13 = vpop.f32.mrf.mxu1 }
 0x12b   :  { %1641 = vmatmul.msk.f32.gmra.mxu0 %vm84_vm1, %v45_v16  ;;  %1682 = vmatmul.msk.f32.gmra.mxu1 %vm84_vm1, %v45_v16  ;;  %v48_v16 = vld [vmem:[%s3042_s0 + $0x128] sm:$0xff] }
 0x130   :  { %v2133_v22 = vpop.f32.mrf.mxu0  ;;  %v2135_v23 = vpop.f32.mrf.mxu1 }
 0x133   :  { %1642 = vmatmul.msk.f32.gmra.mxu0 %vm84_vm1, %v46_v26  ;;  %1683 = vmatmul.msk.f32.gmra.mxu1 %vm84_vm1, %v46_v26  ;;  %v489_v26 = vmul.f32 0.01, %v370_v47 }
 0x138   :  { %v289_v33 = vpop.f32.mrf.mxu0  ;;  %v426_v34 = vpop.f32.mrf.mxu1 }
 0x139   :  { %v290_v36 = vadd.f32 %v289_v33, %v2129_v20  ;;  %v427_v37 = vadd.f32 %v426_v34, %v2131_v21  ;;  %v569_v33 = vmax.f32 %v370_v47, %v489_v26 }
 0x13b   :  { %v526_v40 = vmul.f32 0.01, %v290_v36  ;;  %v527_v41 = vmul.f32 0.01, %v427_v37  ;;  %1643 = vmatmul.msk.f32.gmra.mxu0 %vm84_vm1, %v47_v35  ;;  %1684 = vmatmul.msk.f32.gmra.mxu1 %vm84_vm1, %v47_v35 }
 0x13d   :  { %v606_v50 = vmax.f32 %v290_v36, %v526_v40  ;;  %v607_v53 = vmax.f32 %v427_v37, %v527_v41  ;;  %v568_v36 = vmax.f32 %v233_v44, %v488_v19  ;;  %v490_v41 = vmul.f32 0.01, %v236_v29 }
 0x13f   :  { %v646_v56 = vmax.f32 %v566_v43, %v606_v50  ;;  %v647_v59 = vmax.f32 %v567_v42, %v607_v53  ;;  %v491_v42 = vmul.f32 0.01, %v373_v30  ;;  %v49_v53 = vld [vmem:[%s3042_s0 + $0x130] sm:$0xff] }
 0x140   :  { %v292_v62 = vpop.f32.mrf.mxu0  ;;  %v429_v7 = vpop.f32.mrf.mxu1 }
 0x141   :  { %v293_v27 = vadd.f32 %v292_v62, %v2129_v20  ;;  %v430_v45 = vadd.f32 %v429_v7, %v2131_v21  ;;  %784 = vmatmul.f32.vlgmr.msra.gmra.mxu2 %v646_v56  ;;  %1688 = vmatmul.msk.f32.vlgmr.msra.gmra.mxu3 %vm707_vm2, %v647_v59  ;;  %v571_v44 = vmax.f32 %v373_v30, %v491_v42 }
 0x142   :  { %v570_v59 = vmax.f32 %v236_v29, %v490_v41  ;;  %v239_v62 = vadd.f32 %v1922_v51, %v2129_v20  ;;  %v376_v7 = vadd.f32 %v1924_v52, %v2131_v21 }
 0x143   :  { %v528_v46 = vmul.f32 0.01, %v293_v27  ;;  %v529_v28 = vmul.f32 0.01, %v430_v45  ;;  %1644 = vmatmul.msk.f32.gmra.mxu0 %vm84_vm1, %v48_v16  ;;  %1685 = vmatmul.msk.f32.gmra.mxu1 %vm84_vm1, %v48_v16 }
 0x145   :  { %v608_v34 = vmax.f32 %v293_v27, %v528_v46  ;;  %v609_v35 = vmax.f32 %v430_v45, %v529_v28  ;;  %v50_v28 = vld [vmem:[%s3042_s0 + $0x138] sm:$0xff] }
 0x147   :  { %v648_v37 = vmax.f32 %v568_v36, %v608_v34  ;;  %v649_v40 = vmax.f32 %v569_v33, %v609_v35  ;;  %v492_v33 = vmul.f32 0.01, %v239_v62  ;;  %v493_v34 = vmul.f32 0.01, %v376_v7 }
 0x148   :  { %v295_v43 = vpop.f32.mrf.mxu0  ;;  %v432_v50 = vpop.f32.mrf.mxu1  ;;  %v242_v35 = vadd.f32 %v1931_v54, %v2129_v20  ;;  %v379_v36 = vadd.f32 %v1933_v55, %v2131_v21 }
 0x149   :  { %v296_v56 = vadd.f32 %v295_v43, %v2129_v20  ;;  %v433_v48 = vadd.f32 %v432_v50, %v2131_v21  ;;  %787 = vmatmul.f32.gmra.mxu2 %v648_v37  ;;  %1689 = vmatmul.msk.f32.gmra.mxu3 %vm707_vm2, %v649_v40  ;;  %v573_v37 = vmax.f32 %v376_v7, %v493_v34 }
 0x14a   :  { %v572_v42 = vmax.f32 %v239_v62, %v492_v33  ;;  %v245_v62 = vadd.f32 %v1940_v57, %v2129_v20 }
 0x14b   :  { %v530_v49 = vmul.f32 0.01, %v296_v56  ;;  %v531_v47 = vmul.f32 0.01, %v433_v48  ;;  %1645 = vmatmul.msk.f32.gmra.mxu0 %vm84_vm1, %v49_v53  ;;  %1686 = vmatmul.msk.f32.gmra.mxu1 %vm84_vm1, %v49_v53  ;;  %v494_v53 = vmul.f32 0.01, %v242_v35 }
 0x14c   :  { %v496_v33 = vmul.f32 0.01, %v245_v62 }
 0x14d   :  { %v610_v16 = vmax.f32 %v296_v56, %v530_v49  ;;  %v611_v19 = vmax.f32 %v433_v48, %v531_v47  ;;  %v495_v56 = vmul.f32 0.01, %v379_v36  ;;  %v574_v7 = vmax.f32 %v242_v35, %v494_v53 }
 0x14f   :  { %v650_v26 = vmax.f32 %v570_v59, %v610_v16  ;;  %v651_v27 = vmax.f32 %v571_v44, %v611_v19  ;;  %v575_v55 = vmax.f32 %v379_v36, %v495_v56  ;;  %v382_v16 = vadd.f32 %v1942_v58, %v2131_v21 }
 0x150   :  { %v298_v45 = vpop.f32.mrf.mxu0  ;;  %v435_v46 = vpop.f32.mrf.mxu1  ;;  %v248_v58 = vadd.f32 %v1949_v60, %v2129_v20 }
 0x151   :  { %v299_v29 = vadd.f32 %v298_v45, %v2129_v20  ;;  %v436_v30 = vadd.f32 %v435_v46, %v2131_v21  ;;  %790 = vmatmul.f32.gmra.mxu2 %v650_v26  ;;  %1690 = vmatmul.msk.f32.gmra.mxu3 %vm707_vm2, %v651_v27  ;;  %v497_v34 = vmul.f32 0.01, %v382_v16 }
 0x153   :  { %v532_v51 = vmul.f32 0.01, %v299_v29  ;;  %v533_v52 = vmul.f32 0.01, %v436_v30  ;;  %1646 = vmatmul.msk.f32.gmra.mxu0 %vm84_vm1, %v50_v28  ;;  %1687 = vmatmul.msk.f32.gmra.mxu1 %vm84_vm1, %v50_v28  ;;  %v577_v35 = vmax.f32 %v382_v16, %v497_v34  ;;  %v391_v34 = vadd.f32 %v1969_v3, %v2131_v21 }
 0x155   :  { %v612_v40 = vmax.f32 %v299_v29, %v532_v51  ;;  %v613_v41 = vmax.f32 %v436_v30, %v533_v52  ;;  %v385_v52 = vadd.f32 %v1951_v61, %v2131_v21 }
 0x157   :  { %v652_v43 = vmax.f32 %v572_v42, %v612_v40  ;;  %v653_v50 = vmax.f32 %v573_v37, %v613_v41  ;;  %v576_v40 = vmax.f32 %v245_v62, %v496_v33 }
 0x158   :  { %v301_v48 = vpop.f32.mrf.mxu0  ;;  %v438_v49 = vpop.f32.mrf.mxu1 }
 0x159   :  { %v302_v47 = vadd.f32 %v301_v48, %v2129_v20  ;;  %v439_v44 = vadd.f32 %v438_v49, %v2131_v21  ;;  %793 = vmatmul.f32.gmra.mxu2 %v652_v43  ;;  %1691 = vmatmul.msk.f32.gmra.mxu3 %vm707_vm2, %v653_v50  ;;  %v498_v43 = vmul.f32 0.01, %v248_v58  ;;  %v499_v50 = vmul.f32 0.01, %v385_v52 }
 0x15b   :  { %v534_v54 = vmul.f32 0.01, %v302_v47  ;;  %v535_v59 = vmul.f32 0.01, %v439_v44  ;;  %v579_v61 = vmax.f32 %v385_v52, %v499_v50 }
 0x15d   :  { %v614_v19 = vmax.f32 %v302_v47, %v534_v54  ;;  %v615_v26 = vmax.f32 %v439_v44, %v535_v59  ;;  %v578_v44 = vmax.f32 %v248_v58, %v498_v43  ;;  %v251_v54 = vadd.f32 %v1958_v63, %v2129_v20 }
 0x15e   :  { %v388_v59 = vadd.f32 %v1960_v0, %v2131_v21  ;;  %v254_v0 = vadd.f32 %v1967_v2, %v2129_v20 }
 0x15f   :  { %v654_v27 = vmax.f32 %v574_v7, %v614_v19  ;;  %v655_v45 = vmax.f32 %v575_v55, %v615_v26 }
 0x160   :  { %v304_v46 = vpop.f32.mrf.mxu0  ;;  %v441_v28 = vpop.f32.mrf.mxu1 }
 0x161   :  { %v305_v29 = vadd.f32 %v304_v46, %v2129_v20  ;;  %v442_v30 = vadd.f32 %v441_v28, %v2131_v21  ;;  %796 = vmatmul.f32.gmra.mxu2 %v654_v27  ;;  %1692 = vmatmul.msk.f32.gmra.mxu3 %vm707_vm2, %v655_v45  ;;  %v500_v27 = vmul.f32 0.01, %v251_v54  ;;  %v501_v45 = vmul.f32 0.01, %v388_v59 }
 0x163   :  { %v536_v51 = vmul.f32 0.01, %v305_v29  ;;  %v537_v57 = vmul.f32 0.01, %v442_v30 }
 0x165   :  { %v616_v36 = vmax.f32 %v305_v29, %v536_v51  ;;  %v617_v37 = vmax.f32 %v442_v30, %v537_v57  ;;  %v581_v29 = vmax.f32 %v388_v59, %v501_v45  ;;  %v580_v57 = vmax.f32 %v251_v54, %v500_v27 }
 0x167   :  { %v656_v41 = vmax.f32 %v576_v40, %v616_v36  ;;  %v657_v42 = vmax.f32 %v577_v35, %v617_v37  ;;  %v502_v35 = vmul.f32 0.01, %v254_v0  ;;  %v503_v36 = vmul.f32 0.01, %v391_v34 }
 0x168   :  { %v307_v53 = vpop.f32.mrf.mxu0  ;;  %v444_v56 = vpop.f32.mrf.mxu1 }
 0x169   :  { %v308_v48 = vadd.f32 %v307_v53, %v2129_v20  ;;  %v445_v49 = vadd.f32 %v444_v56, %v2131_v21  ;;  %799 = vmatmul.f32.gmra.mxu2 %v656_v41  ;;  %1693 = vmatmul.msk.f32.gmra.mxu3 %vm707_vm2, %v657_v42  ;;  %v583_v3 = vmax.f32 %v391_v34, %v503_v36 }
 0x16a   :  { %v582_v50 = vmax.f32 %v254_v0, %v502_v35  ;;  %v257_v53 = vadd.f32 %v1976_v5, %v2129_v20  ;;  %v394_v56 = vadd.f32 %v1978_v6, %v2131_v21  ;;  %v260_v6 = vadd.f32 %v1985_v8, %v2129_v20 }
 0x16b   :  { %v538_v60 = vmul.f32 0.01, %v308_v48  ;;  %v539_v47 = vmul.f32 0.01, %v445_v49 }
 0x16c   :  { %v504_v54 = vmul.f32 0.01, %v257_v53  ;;  %v505_v59 = vmul.f32 0.01, %v394_v56 }
 0x16d   :  { %v618_v55 = vmax.f32 %v308_v48, %v538_v60  ;;  %v619_v7 = vmax.f32 %v445_v49, %v539_v47 }
 0x16e   :  { %v584_v45 = vmax.f32 %v257_v53, %v504_v54 }
 0x16f   :  { %v658_v62 = vmax.f32 %v578_v44, %v618_v55  ;;  %v659_v16 = vmax.f32 %v579_v61, %v619_v7 }
 0x170   :  { %v310_v19 = vpop.f32.mrf.mxu0  ;;  %v447_v26 = vpop.f32.mrf.mxu1 }
 0x171   :  { %v311_v46 = vadd.f32 %v310_v19, %v2129_v20  ;;  %v448_v28 = vadd.f32 %v447_v26, %v2131_v21  ;;  %802 = vmatmul.f32.gmra.mxu2 %v658_v62  ;;  %1694 = vmatmul.msk.f32.gmra.mxu3 %vm707_vm2, %v659_v16  ;;  %v397_v16 = vadd.f32 %v1987_v9, %v2131_v21 }
 0x172   :  { %v585_v19 = vmax.f32 %v394_v56, %v505_v59  ;;  %v403_v56 = vadd.f32 %v2005_v15, %v2131_v21 }
 0x173   :  { %v540_v33 = vmul.f32 0.01, %v311_v46  ;;  %v541_v63 = vmul.f32 0.01, %v448_v28 }
 0x174   :  { %v511_v59 = vmul.f32 0.01, %v403_v56 }
 0x175   :  { %v620_v30 = vmax.f32 %v311_v46, %v540_v33  ;;  %v621_v51 = vmax.f32 %v448_v28, %v541_v63  ;;  %v506_v33 = vmul.f32 0.01, %v260_v6  ;;  %v507_v63 = vmul.f32 0.01, %v397_v16 }
 0x176   :  { %v591_v15 = vmax.f32 %v403_v56, %v511_v59  ;;  %v412_v56 = vadd.f32 %v2056_v32, %v2131_v21  ;;  %v278_v32 = vadd.f32 %v2075_v38, %v2129_v20 }
 0x177   :  { %v660_v58 = vmax.f32 %v580_v57, %v620_v30  ;;  %v661_v52 = vmax.f32 %v581_v29, %v621_v51  ;;  %v587_v9 = vmax.f32 %v397_v16, %v507_v63  ;;  %v586_v57 = vmax.f32 %v260_v6, %v506_v33 }
 0x178   :  { %v313_v37 = vpop.f32.mrf.mxu0  ;;  %v450_v40 = vpop.f32.mrf.mxu1  ;;  %v517_v59 = vmul.f32 0.01, %v412_v56  ;;  %v518_v38 = vmul.f32 0.01, %v278_v32 }
 0x179   :  { %v314_v41 = vadd.f32 %v313_v37, %v2129_v20  ;;  %v451_v42 = vadd.f32 %v450_v40, %v2131_v21  ;;  %805 = vmatmul.f32.gmra.mxu2 %v660_v58  ;;  %1695 = vmatmul.msk.f32.gmra.mxu3 %vm707_vm2, %v661_v52  ;;  %v263_v58 = vadd.f32 %v1994_v11, %v2129_v20 }
 0x17a   :  { %v400_v52 = vadd.f32 %v1996_v12, %v2131_v21  ;;  %v266_v12 = vadd.f32 %v2003_v14, %v2129_v20 }
 0x17b   :  { %v542_v2 = vmul.f32 0.01, %v314_v41  ;;  %v543_v43 = vmul.f32 0.01, %v451_v42 }
 0x17c   :  { %v510_v54 = vmul.f32 0.01, %v266_v12 }
 0x17d   :  { %v622_v48 = vmax.f32 %v314_v41, %v542_v2  ;;  %v623_v49 = vmax.f32 %v451_v42, %v543_v43  ;;  %v508_v2 = vmul.f32 0.01, %v263_v58  ;;  %v509_v43 = vmul.f32 0.01, %v400_v52 }
 0x17e   :  { %v590_v16 = vmax.f32 %v266_v12, %v510_v54  ;;  %v275_v12 = vadd.f32 %v2054_v31, %v2129_v20 }
 0x17f   :  { %v662_v60 = vmax.f32 %v582_v50, %v622_v48  ;;  %v663_v47 = vmax.f32 %v583_v3, %v623_v49  ;;  %v589_v48 = vmax.f32 %v400_v52, %v509_v43 }
 0x180   :  { %v316_v61 = vpop.f32.mrf.mxu0  ;;  %v453_v44 = vpop.f32.mrf.mxu1  ;;  %v516_v54 = vmul.f32 0.01, %v275_v12 }
 0x181   :  { %v317_v55 = vadd.f32 %v316_v61, %v2129_v20  ;;  %v454_v7 = vadd.f32 %v453_v44, %v2131_v21  ;;  %808 = vmatmul.f32.gmra.mxu2 %v662_v60  ;;  %1696 = vmatmul.msk.f32.gmra.mxu3 %vm707_vm2, %v663_v47  ;;  %v588_v47 = vmax.f32 %v263_v58, %v508_v2 }
 0x183   :  { %v544_v62 = vmul.f32 0.01, %v317_v55  ;;  %v545_v5 = vmul.f32 0.01, %v454_v7 }
 0x185   :  { %v624_v26 = vmax.f32 %v317_v55, %v544_v62  ;;  %v625_v27 = vmax.f32 %v454_v7, %v545_v5 }
 0x187   :  { %v664_v46 = vmax.f32 %v584_v45, %v624_v26  ;;  %v665_v28 = vmax.f32 %v585_v19, %v625_v27  ;;  %v269_v19 = vadd.f32 %v2012_v17, %v2129_v20  ;;  %v406_v26 = vadd.f32 %v2014_v18, %v2131_v21 }
 0x188   :  { %v319_v0 = vpop.f32.mrf.mxu0  ;;  %v456_v34 = vpop.f32.mrf.mxu1 }
 0x189   :  { %v320_v29 = vadd.f32 %v319_v0, %v2129_v20  ;;  %v457_v30 = vadd.f32 %v456_v34, %v2131_v21  ;;  %811 = vmatmul.f32.gmra.mxu2 %v664_v46  ;;  %1697 = vmatmul.msk.f32.gmra.mxu3 %vm707_vm2, %v665_v28  ;;  %v987_v46 = vld [vmem:[%s3041_s1 + $0x320] sm:$0xff]  ;;  %v512_v17 = vmul.f32 0.01, %v269_v19 }
 0x18a   :  { %v979_v28 = vld [vmem:[%s3041_s1 + $0x2a0] sm:$0xff]  ;;  %1012 = vmatpush.msrb.mxu3 %v987_v46 }
 0x18b   :  { %v546_v8 = vmul.f32 0.01, %v320_v29  ;;  %v547_v51 = vmul.f32 0.01, %v457_v30  ;;  %1059 = vmatpush.msrb.mxu2 %v979_v28 }
 0x18d   :  { %v626_v35 = vmax.f32 %v320_v29, %v546_v8  ;;  %v627_v36 = vmax.f32 %v457_v30, %v547_v51  ;;  %v513_v29 = vmul.f32 0.01, %v406_v26 }
 0x18f   :  { %v666_v37 = vmax.f32 %v586_v57, %v626_v35  ;;  %v667_v40 = vmax.f32 %v587_v9, %v627_v36  ;;  %v272_v9 = vadd.f32 %v2033_v24, %v2129_v20  ;;  %v409_v57 = vadd.f32 %v2035_v25, %v2131_v21 }
 0x190   :  { %v322_v41 = vpop.f32.mrf.mxu0  ;;  %v459_v42 = vpop.f32.mrf.mxu1  ;;  %v593_v58 = vmax.f32 %v406_v26, %v513_v29  ;;  %v592_v36 = vmax.f32 %v269_v19, %v512_v17  ;;  %v986_v19 = vld [vmem:[%s3041_s1 + $0x310] sm:$0xff]  ;;  %v1258_v17 = vld [vmem:[%s3041_s1 + $0x838] sm:$0xff] }
 0x191   :  { %v323_v3 = vadd.f32 %v322_v41, %v2129_v20  ;;  %v460_v50 = vadd.f32 %v459_v42, %v2131_v21  ;;  %814 = vmatmul.f32.gmra.mxu2 %v666_v37  ;;  %1698 = vmatmul.msk.f32.gmra.mxu3 %vm707_vm2, %v667_v40  ;;  %v514_v41 = vmul.f32 0.01, %v272_v9  ;;  %v515_v42 = vmul.f32 0.01, %v409_v57  ;;  %v978_v26 = vld [vmem:[%s3041_s1 + $0x290] sm:$0xff] }
 0x192   :  { %1013 = vmatpush.msrb.mxu3 %v986_v19  ;;  %1060 = vmatpush.msrb.mxu2 %v978_v26 }
 0x193   :  { %v548_v53 = vmul.f32 0.01, %v323_v3  ;;  %v549_v11 = vmul.f32 0.01, %v460_v50  ;;  %v595_v25 = vmax.f32 %v409_v57, %v515_v42  ;;  %1454 = vmatpush.msrb.mxu0 %v1258_v17  ;;  %v984_v17 = vld [vmem:[%s3041_s1 + $0x2f0] sm:$0xff] }
 0x195   :  { %v628_v49 = vmax.f32 %v323_v3, %v548_v53  ;;  %v629_v60 = vmax.f32 %v460_v50, %v549_v11  ;;  %v594_v11 = vmax.f32 %v272_v9, %v514_v41 }
 0x197   :  { %v668_v61 = vmax.f32 %v588_v47, %v628_v49  ;;  %v669_v44 = vmax.f32 %v589_v48, %v629_v60 }
 0x198   :  { %v325_v55 = vpop.f32.mrf.mxu0  ;;  %v462_v7 = vpop.f32.mrf.mxu1 }
 0x199   :  { %v326_v62 = vadd.f32 %v325_v55, %v2129_v20  ;;  %v463_v5 = vadd.f32 %v462_v7, %v2131_v21  ;;  %817 = vmatmul.f32.gmra.mxu2 %v668_v61  ;;  %1699 = vmatmul.msk.f32.gmra.mxu3 %vm707_vm2, %v669_v44 }
 0x19b   :  { %v550_v14 = vmul.f32 0.01, %v326_v62  ;;  %v551_v6 = vmul.f32 0.01, %v463_v5 }
 0x19d   :  { %v630_v27 = vmax.f32 %v326_v62, %v550_v14  ;;  %v631_v45 = vmax.f32 %v463_v5, %v551_v6  ;;  %v415_v5 = vadd.f32 %v2077_v39, %v2131_v21  ;;  %v597_v14 = vmax.f32 %v412_v56, %v517_v59 }
 0x19f   :  { %v670_v33 = vmax.f32 %v590_v16, %v630_v27  ;;  %v671_v63 = vmax.f32 %v591_v15, %v631_v45  ;;  %v596_v16 = vmax.f32 %v275_v12, %v516_v54  ;;  %v519_v46 = vmul.f32 0.01, %v415_v5  ;;  %v977_v54 = vld [vmem:[%s3041_s1 + $0x280] sm:$0xff] }
 0x1a0   :  { %v328_v0 = vpop.f32.mrf.mxu0  ;;  %v465_v34 = vpop.f32.mrf.mxu1  ;;  %1061 = vmatpush.msrb.mxu2 %v977_v54 }
 0x1a1   :  { %v329_v18 = vadd.f32 %v328_v0, %v2129_v20  ;;  %v466_v30 = vadd.f32 %v465_v34, %v2131_v21  ;;  %820 = vmatmul.f32.gmra.mxu2 %v670_v33  ;;  %1700 = vmatmul.msk.f32.gmra.mxu3 %vm707_vm2, %v671_v63  ;;  %v599_v29 = vmax.f32 %v415_v5, %v519_v46 }
 0x1a3   :  { %v552_v8 = vmul.f32 0.01, %v329_v18  ;;  %v553_v51 = vmul.f32 0.01, %v466_v30 }
 0x1a5   :  { %v632_v52 = vmax.f32 %v329_v18, %v552_v8  ;;  %v633_v35 = vmax.f32 %v466_v30, %v553_v51  ;;  %v598_v18 = vmax.f32 %v278_v32, %v518_v38  ;;  %v281_v30 = vadd.f32 %v2108_v1, %v2129_v20 }
 0x1a6   :  { %v418_v8 = vadd.f32 %v2110_v4, %v2131_v21  ;;  %v284_v4 = vadd.f32 %v2117_v10, %v2129_v20  ;;  %v424_v32 = vadd.f32 %v2135_v23, %v2131_v21  ;;  %v1256_v23 = vld [vmem:[%s3041_s1 + $0x828] sm:$0xff] }
 0x1a7   :  { %v672_v37 = vmax.f32 %v592_v36, %v632_v52  ;;  %v673_v40 = vmax.f32 %v593_v58, %v633_v35  ;;  %v520_v36 = vmul.f32 0.01, %v281_v30  ;;  %1455 = vmatpush.msrb.mxu0 %v1256_v23 }
 0x1a8   :  { %v331_v2 = vpop.f32.mrf.mxu0  ;;  %v468_v43 = vpop.f32.mrf.mxu1  ;;  %v522_v56 = vmul.f32 0.01, %v284_v4 }
 0x1a9   :  { %v332_v3 = vadd.f32 %v331_v2, %v2129_v20  ;;  %v469_v50 = vadd.f32 %v468_v43, %v2131_v21  ;;  %823 = vmatmul.f32.gmra.mxu2 %v672_v37  ;;  %1701 = vmatmul.msk.f32.gmra.mxu3 %vm707_vm2, %v673_v40  ;;  %v521_v37 = vmul.f32 0.01, %v418_v8  ;;  %v421_v2 = vadd.f32 %v2119_v13, %v2131_v21 }
 0x1aa   :  { %v602_v59 = vmax.f32 %v284_v4, %v522_v56 }
 0x1ab   :  { %v554_v24 = vmul.f32 0.01, %v332_v3  ;;  %v555_v53 = vmul.f32 0.01, %v469_v50 }
 0x1ad   :  { %v634_v48 = vmax.f32 %v332_v3, %v554_v24  ;;  %v635_v49 = vmax.f32 %v469_v50, %v555_v53  ;;  %v600_v50 = vmax.f32 %v281_v30, %v520_v36  ;;  %v601_v24 = vmax.f32 %v418_v8, %v521_v37  ;;  %v1254_v8 = vld [vmem:[%s3041_s1 + $0x818] sm:$0xff] }
 0x1ae   :  { %1456 = vmatpush.msrb.mxu0 %v1254_v8 }
 0x1af   :  { %v674_v60 = vmax.f32 %v594_v11, %v634_v48  ;;  %v675_v47 = vmax.f32 %v595_v25, %v635_v49  ;;  %v523_v48 = vmul.f32 0.01, %v421_v2 }
 0x1b0   :  { %v334_v61 = vpop.f32.mrf.mxu0  ;;  %v471_v44 = vpop.f32.mrf.mxu1 }
 0x1b1   :  { %v335_v55 = vadd.f32 %v334_v61, %v2129_v20  ;;  %v472_v7 = vadd.f32 %v471_v44, %v2131_v21  ;;  %826 = vmatmul.f32.gmra.mxu2 %v674_v60  ;;  %1702 = vmatmul.msk.f32.gmra.mxu3 %vm707_vm2, %v675_v47  ;;  %v985_v44 = vld [vmem:[%s3041_s1 + $0x300] sm:$0xff] }
 0x1b2   :  { %1014 = vmatpush.msrb.mxu3 %v985_v44 }
 0x1b3   :  { %v556_v62 = vmul.f32 0.01, %v335_v55  ;;  %v557_v31 = vmul.f32 0.01, %v472_v7 }
 0x1b4   :  { %1015 = vmatpush.msrb.mxu3 %v984_v17 }
 0x1b5   :  { %v636_v6 = vmax.f32 %v335_v55, %v556_v62  ;;  %v637_v15 = vmax.f32 %v472_v7, %v557_v31  ;;  %v603_v55 = vmax.f32 %v421_v2, %v523_v48  ;;  %v287_v31 = vadd.f32 %v2133_v22, %v2129_v20 }
 0x1b7   :  { %v676_v27 = vmax.f32 %v596_v16, %v636_v6  ;;  %v677_v45 = vmax.f32 %v597_v14, %v637_v15  ;;  %v524_v26 = vmul.f32 0.01, %v287_v31 }
 0x1b8   :  { %v337_v28 = vpop.f32.mrf.mxu0  ;;  %v474_v39 = vpop.f32.mrf.mxu1 }
 0x1b9   :  { %v338_v33 = vadd.f32 %v337_v28, %v2129_v20  ;;  %v475_v63 = vadd.f32 %v474_v39, %v2131_v21  ;;  %829 = vmatmul.f32.gmra.mxu2 %v676_v27  ;;  %1703 = vmatmul.msk.f32.gmra.mxu3 %vm707_vm2, %v677_v45  ;;  %v525_v27 = vmul.f32 0.01, %v424_v32 }
 0x1bb   :  { %v558_v0 = vmul.f32 0.01, %v338_v33  ;;  %v559_v34 = vmul.f32 0.01, %v475_v63 }
 0x1bd   :  { %v638_v51 = vmax.f32 %v338_v33, %v558_v0  ;;  %v639_v9 = vmax.f32 %v475_v63, %v559_v34  ;;  %v604_v33 = vmax.f32 %v287_v31, %v524_v26  ;;  %v605_v63 = vmax.f32 %v424_v32, %v525_v27  ;;  %v981_v27 = vld [vmem:[%s3041_s1 + $0x2c0] sm:$0xff] }
 0x1bf   :  { %v678_v57 = vmax.f32 %v598_v18, %v638_v51  ;;  %v679_v58 = vmax.f32 %v599_v29, %v639_v9  ;;  %v976_v29 = vld [vmem:[%s3041_s1 + $0x270] sm:$0xff] }
 0x1c0   :  { %v340_v52 = vpop.f32.mrf.mxu0  ;;  %v477_v35 = vpop.f32.mrf.mxu1  ;;  %1062 = vmatpush.msrb.mxu2 %v976_v29 }
 0x1c1   :  { %v341_v40 = vadd.f32 %v340_v52, %v2129_v20  ;;  %v478_v41 = vadd.f32 %v477_v35, %v2131_v21  ;;  %832 = vmatmul.f32.gmra.mxu2 %v678_v57  ;;  %1704 = vmatmul.msk.f32.gmra.mxu3 %vm707_vm2, %v679_v58  ;;  %v983_v52 = vld [vmem:[%s3041_s1 + $0x2e0] sm:$0xff] }
 0x1c2   :  { %v975_v35 = vld [vmem:[%s3041_s1 + $0x260] sm:$0xff]  ;;  %1016 = vmatpush.msrb.mxu3 %v983_v52 }
 0x1c3   :  { %v560_v42 = vmul.f32 0.01, %v341_v40  ;;  %v561_v1 = vmul.f32 0.01, %v478_v41  ;;  %1063 = vmatpush.msrb.mxu2 %v975_v35 }
 0x1c4   :  { %v2306_v43 = vpop.f32.mrf.mxu2  ;;  %v2308_v3 = vpop.f32.mrf.mxu3 }
 0x1c5   :  { %v640_v53 = vmax.f32 %v341_v40, %v560_v42  ;;  %v641_v25 = vmax.f32 %v478_v41, %v561_v1  ;;  %v974_v40 = vld [vmem:[%s3041_s1 + $0x250] sm:$0xff]  ;;  %v973_v41 = vld [vmem:[%s3041_s1 + $0x240] sm:$0xff] }
 0x1c6   :  { %1064 = vmatpush.msrb.mxu2 %v974_v40  ;;  %v2378_v42 = vld [vmem:[%s3041_s1 + $0x220] ss:$0 sm:$0xff] }
 0x1c7   :  { %v680_v11 = vmax.f32 %v600_v50, %v640_v53  ;;  %v681_v12 = vmax.f32 %v601_v24, %v641_v25  ;;  %v1252_v50 = vld [vmem:[%s3041_s1 + $0x808] sm:$0xff]  ;;  %v972_v24 = vld [vmem:[%s3041_s1 + $0x230] sm:$0xff] }
 0x1c8   :  { %v343_v49 = vpop.f32.mrf.mxu0  ;;  %v480_v60 = vpop.f32.mrf.mxu1  ;;  %1065 = vmatpush.msrb.mxu2 %v973_v41  ;;  %1457 = vmatpush.msrb.mxu0 %v1252_v50  ;;  %v982_v25 = vld [vmem:[%s3041_s1 + $0x2d0] sm:$0xff] }
 0x1c9   :  { %v344_v47 = vadd.f32 %v343_v49, %v2129_v20  ;;  %v481_v10 = vadd.f32 %v480_v60, %v2131_v21  ;;  %835 = vmatmul.f32.gmra.mxu2 %v680_v11  ;;  %1705 = vmatmul.msk.f32.gmra.mxu3 %vm707_vm2, %v681_v12  ;;  %v1250_v49 = vld [vmem:[%s3041_s1 + $0x7f8] sm:$0xff] }
 0x1ca   :  { %1066 = vmatpush.msrb.mxu2 %v972_v24  ;;  %1017 = vmatpush.msrb.mxu3 %v982_v25 }
 0x1cb   :  { %v562_v13 = vmul.f32 0.01, %v344_v47  ;;  %v563_v61 = vmul.f32 0.01, %v481_v10  ;;  %1458 = vmatpush.msrb.mxu0 %v1250_v49 }
 0x1cc   :  { %v2319_v7 = vpop.f32.mrf.mxu2  ;;  %v2321_v62 = vpop.f32.mrf.mxu3  ;;  %1018 = vmatpush.msrb.mxu3 %v981_v27 }
 0x1cd   :  { %v642_v5 = vmax.f32 %v344_v47, %v562_v13  ;;  %v643_v14 = vmax.f32 %v481_v10, %v563_v61  ;;  %v786_v13 = vadd.f32 %v2306_v43, %v2378_v42  ;;  %v789_v32 = vadd.f32 %v2319_v7, %v2378_v42 }
 0x1cf   :  { %v682_v6 = vmax.f32 %v602_v59, %v642_v5  ;;  %v683_v15 = vmax.f32 %v603_v55, %v643_v14  ;;  %v863_v44 = vadd.f32 %v2308_v3, %v786_v13 }
 0x1d0   :  { %v346_v16 = vpop.f32.mrf.mxu0  ;;  %v483_v19 = vpop.f32.mrf.mxu1 }
 0x1d1   :  { %v347_v45 = vadd.f32 %v346_v16, %v2129_v20  ;;  %v484_v38 = vadd.f32 %v483_v19, %v2131_v21  ;;  %838 = vmatmul.f32.gmra.mxu2 %v682_v6  ;;  %1706 = vmatmul.msk.f32.gmra.mxu3 %vm707_vm2, %v683_v15  ;;  %v922_v31 = vmul.f32 0.01, %v863_v44  ;;  %v866_v15 = vadd.f32 %v2321_v62, %v789_v32 }
 0x1d3   :  { %v564_v46 = vmul.f32 0.01, %v347_v45  ;;  %v565_v22 = vmul.f32 0.01, %v484_v38  ;;  %v942_v6 = vmax.f32 %v863_v44, %v922_v31 }
 0x1d4   :  { %v2333_v28 = vpop.f32.mrf.mxu2  ;;  %v2335_v39 = vpop.f32.mrf.mxu3 }
 0x1d5   :  { %v644_v0 = vmax.f32 %v347_v45, %v564_v46  ;;  %v645_v20 = vmax.f32 %v484_v38, %v565_v22  ;;  %v923_v45 = vmul.f32 0.01, %v866_v15  ;;  %v792_v7 = vadd.f32 %v2333_v28, %v2378_v42  ;;  %v980_v28 = vld [vmem:[%s3041_s1 + $0x2b0] sm:$0xff] }
 0x1d6   :  { %1019 = vmatpush.msrb.mxu3 %v980_v28  ;;  %v1123_v28 = vld [vmem:[%s3041_s1 + $0x400] sm:$0xff] }
 0x1d7   :  { %v684_v34 = vmax.f32 %v604_v33, %v644_v0  ;;  %v685_v21 = vmax.f32 %v605_v63, %v645_v20  ;;  %v943_v46 = vmax.f32 %v866_v15, %v923_v45  ;;  %v869_v22 = vadd.f32 %v2335_v39, %v792_v7  ;;  %v1244_v45 = vld [vmem:[%s3041_s1 + $0x7c8] sm:$0xff] }
 0x1d9   :  { %841 = vmatmul.f32.gmra.mxu2 %v684_v34  ;;  %1707 = vmatmul.msk.f32.gmra.mxu3 %vm707_vm2, %v685_v21  ;;  %v1248_v34 = vld [vmem:[%s3041_s1 + $0x7e8] sm:$0xff]  ;;  %v924_v21 = vmul.f32 0.01, %v869_v22 }
 0x1da   :  { %1459 = vmatpush.msrb.mxu0 %v1248_v34 }
 0x1db   :  { %v944_v8 = vmax.f32 %v869_v22, %v924_v21  ;;  %v1127_v22 = vld [vmem:[%s3041_s1 + $0x420] sm:$0xff] }
 0x1dc   :  { %v2344_v18 = vpop.f32.mrf.mxu2  ;;  %v2346_v30 = vpop.f32.mrf.mxu3 }
 0x1dd   :  { %v795_v39 = vadd.f32 %v2344_v18, %v2378_v42 }
 0x1df   :  { %v872_v52 = vadd.f32 %v2346_v30, %v795_v39  ;;  %v1246_v30 = vld [vmem:[%s3041_s1 + $0x7d8] sm:$0xff] }
 0x1e0   :  { %1460 = vmatpush.msrb.mxu0 %v1246_v30 }
 0x1e2   :  { %1461 = vmatpush.msrb.mxu0 %v1244_v45  ;;  %v1104_v45 = vld [vmem:[%s3041_s1 + $0x368] sm:$0xff] }
 0x1e4   :  { %v2351_v51 = vpop.f32.mrf.mxu2  ;;  %v2353_v9 = vpop.f32.mrf.mxu3 }
 0x1e5   :  { %v798_v50 = vadd.f32 %v2351_v51, %v2378_v42 }
 0x1ec   :  { %v2355_v57 = vpop.f32.mrf.mxu2  ;;  %v2357_v58 = vpop.f32.mrf.mxu3 }
 0x1ed   :  { %v801_v51 = vadd.f32 %v2355_v57, %v2378_v42 }
 0x1f4   :  { %v2365_v36 = vpop.f32.mrf.mxu2  ;;  %v2367_v37 = vpop.f32.mrf.mxu3 }
 0x1fc   :  { %v806_v1 = vpop.f32.mrf.mxu2  ;;  %v883_v4 = vpop.f32.mrf.mxu3 }
 0x1fd   :  { %v807_v2 = vadd.f32 %v806_v1, %v2378_v42 }
 0x1ff   :  { %v2387_v53 = vadd.f32 %v883_v4, %v807_v2  ;;  %v925_v2 = vmul.f32 0.01, %v872_v52 }
 0x201   :  { %v945_v25 = vmax.f32 %v872_v52, %v925_v2  ;;  %v1120_v2 = vld [vmem:[%s3041_s1 + $0x3e8] sm:$0xff] }
 0x204   :  { %v809_v11 = vpop.f32.mrf.mxu2  ;;  %v886_v12 = vpop.f32.mrf.mxu3 }
 0x205   :  { %v810_v56 = vadd.f32 %v809_v11, %v2378_v42  ;;  %v875_v11 = vadd.f32 %v2353_v9, %v798_v50 }
 0x207   :  { %v2393_v48 = vadd.f32 %v886_v12, %v810_v56 }
 0x20c   :  { %v812_v60 = vpop.f32.mrf.mxu2  ;;  %v889_v47 = vpop.f32.mrf.mxu3 }
 0x20d   :  { %v813_v10 = vadd.f32 %v812_v60, %v2378_v42 }
 0x20f   :  { %v2401_v61 = vadd.f32 %v889_v47, %v813_v10  ;;  %v926_v10 = vmul.f32 0.01, %v875_v11 }
 0x211   :  { %v946_v9 = vmax.f32 %v875_v11, %v926_v10 }
 0x214   :  { %v815_v54 = vpop.f32.mrf.mxu2  ;;  %v892_v59 = vpop.f32.mrf.mxu3 }
 0x215   :  { %v816_v55 = vadd.f32 %v815_v54, %v2378_v42  ;;  %v878_v54 = vadd.f32 %v2357_v58, %v801_v51 }
 0x217   :  { %v893_v5 = vadd.f32 %v892_v59, %v816_v55 }
 0x219   :  { %v932_v14 = vmul.f32 0.01, %v893_v5 }
 0x21b   :  { %v952_v16 = vmax.f32 %v893_v5, %v932_v14  ;;  %v927_v14 = vmul.f32 0.01, %v878_v54 }
 0x21c   :  { %v818_v19 = vpop.f32.mrf.mxu2  ;;  %v895_v43 = vpop.f32.mrf.mxu3 }
 0x21d   :  { %v962_v26 = vmax.f32 %v942_v6, %v952_v16  ;;  %v819_v3 = vadd.f32 %v818_v19, %v2378_v42  ;;  %v804_v6 = vadd.f32 %v2365_v36, %v2378_v42  ;;  %v947_v16 = vmax.f32 %v878_v54, %v927_v14 }
 0x21f   :  { %v896_v38 = vadd.f32 %v895_v43, %v819_v3  ;;  %1713 = vmatmul.msk.f32.vlgmr.msrb.gmra.mxu2 %vm988_vm3, %v962_v26  ;;  %v881_v19 = vadd.f32 %v2367_v37, %v804_v6  ;;  %v1240_v37 = vld [vmem:[%s3041_s1 + $0x7a8] sm:$0xff]  ;;  %v1113_v6 = vld [vmem:[%s3041_s1 + $0x3b0] sm:$0xff] }
 0x221   :  { %v933_v62 = vmul.f32 0.01, %v896_v38  ;;  %v928_v7 = vmul.f32 0.01, %v881_v19 }
 0x223   :  { %v953_v23 = vmax.f32 %v896_v38, %v933_v62  ;;  %v1242_v38 = vld [vmem:[%s3041_s1 + $0x7b8] sm:$0xff]  ;;  %v1129_v62 = vld [vmem:[%s3041_s1 + $0x430] sm:$0xff] }
 0x224   :  { %v821_v33 = vpop.f32.mrf.mxu2  ;;  %v898_v63 = vpop.f32.mrf.mxu3  ;;  %1462 = vmatpush.msrb.mxu0 %v1242_v38  ;;  %1261 = vmatpush.msra.mxu3 %v1129_v62  ;;  %v1099_v38 = vld [vmem:[%s3041_s1 + $0x340] sm:$0xff]  ;;  %v1161_v62 = vld [vmem:[%s3041_s1 + $0x530] sm:$0xff] }
 0x225   :  { %v822_v0 = vadd.f32 %v821_v33, %v2378_v42  ;;  %v963_v20 = vmax.f32 %v943_v46, %v953_v23  ;;  %v1130_v46 = vld [vmem:[%s3041_s1 + $0x438] sm:$0xff]  ;;  %v1128_v23 = vld [vmem:[%s3041_s1 + $0x428] sm:$0xff] }
 0x226   :  { %1281 = vmatpush.msra.mxu2 %v1130_v46  ;;  %1463 = vmatpush.msrb.mxu0 %v1240_v37  ;;  %v1100_v37 = vld [vmem:[%s3041_s1 + $0x348] sm:$0xff]  ;;  %v1162_v46 = vld [vmem:[%s3041_s1 + $0x538] sm:$0xff] }
 0x227   :  { %v899_v17 = vadd.f32 %v898_v63, %v822_v0  ;;  %1714 = vmatmul.msk.f32.gmra.mxu2 %vm988_vm3, %v963_v20  ;;  %v1125_v63 = vld [vmem:[%s3041_s1 + $0x410] sm:$0xff]  ;;  %1262 = vmatpush.msra.mxu3 %v1127_v22  ;;  %v1126_v0 = vld [vmem:[%s3041_s1 + $0x418] sm:$0xff]  ;;  %v948_v20 = vmax.f32 %v881_v19, %v928_v7  ;;  %v1236_v22 = vld [vmem:[%s3041_s1 + $0x788] sm:$0xff] }
 0x228   :  { %1282 = vmatpush.msra.mxu2 %v1128_v23  ;;  %v1110_v19 = vld [vmem:[%s3041_s1 + $0x398] sm:$0xff]  ;;  %v1101_v7 = vld [vmem:[%s3041_s1 + $0x350] sm:$0xff]  ;;  %v1159_v23 = vld [vmem:[%s3041_s1 + $0x520] sm:$0xff] }
 0x229   :  { %v934_v29 = vmul.f32 0.01, %v899_v17  ;;  %1263 = vmatpush.msra.mxu3 %v1125_v63  ;;  %v1157_v63 = vld [vmem:[%s3041_s1 + $0x510] sm:$0xff] }
 0x22a   :  { %1283 = vmatpush.msra.mxu2 %v1126_v0  ;;  %v1158_v0 = vld [vmem:[%s3041_s1 + $0x518] sm:$0xff] }
 0x22b   :  { %v954_v35 = vmax.f32 %v899_v17, %v934_v29  ;;  %v1124_v17 = vld [vmem:[%s3041_s1 + $0x408] sm:$0xff]  ;;  %v1238_v29 = vld [vmem:[%s3041_s1 + $0x798] sm:$0xff]  ;;  %1264 = vmatpush.msra.mxu3 %v1123_v28  ;;  %v1153_v28 = vld [vmem:[%s3041_s1 + $0x4f0] sm:$0xff] }
 0x22c   :  { %v824_v40 = vpop.f32.mrf.mxu2  ;;  %v901_v41 = vpop.f32.mrf.mxu3  ;;  %1464 = vmatpush.msrb.mxu0 %v1238_v29  ;;  %1284 = vmatpush.msra.mxu2 %v1124_v17  ;;  %v1152_v17 = vld [vmem:[%s3041_s1 + $0x4e8] sm:$0xff]  ;;  %v1149_v29 = vld [vmem:[%s3041_s1 + $0x4d0] sm:$0xff] }
 0x22d   :  { %v825_v1 = vadd.f32 %v824_v40, %v2378_v42  ;;  %v964_v4 = vmax.f32 %v944_v8, %v954_v35  ;;  %v1121_v35 = vld [vmem:[%s3041_s1 + $0x3f0] sm:$0xff]  ;;  %v1122_v40 = vld [vmem:[%s3041_s1 + $0x3f8] sm:$0xff] }
 0x22e   :  { %1265 = vmatpush.msra.mxu3 %v1121_v35  ;;  %1285 = vmatpush.msra.mxu2 %v1122_v40  ;;  %v1148_v35 = vld [vmem:[%s3041_s1 + $0x4c8] sm:$0xff]  ;;  %v1145_v40 = vld [vmem:[%s3041_s1 + $0x4b0] sm:$0xff] }
 0x22f   :  { %v902_v24 = vadd.f32 %v901_v41, %v825_v1  ;;  %1715 = vmatmul.msk.f32.gmra.mxu2 %vm988_vm3, %v964_v4  ;;  %v929_v41 = vmul.f32 0.01, %v2387_v53  ;;  %v1119_v4 = vld [vmem:[%s3041_s1 + $0x3e0] sm:$0xff]  ;;  %1465 = vmatpush.msrb.mxu0 %v1236_v22 }
 0x230   :  { %1266 = vmatpush.msra.mxu3 %v1119_v4  ;;  %1286 = vmatpush.msra.mxu2 %v1120_v2  ;;  %v1144_v4 = vld [vmem:[%s3041_s1 + $0x4a8] sm:$0xff]  ;;  %v1234_v2 = vld [vmem:[%s3041_s1 + $0x778] sm:$0xff]  ;;  %v1179_v22 = vld [vmem:[%s3041_s1 + $0x5c0] sm:$0xff] }
 0x231   :  { %v935_v18 = vmul.f32 0.01, %v902_v24  ;;  %1466 = vmatpush.msrb.mxu0 %v1234_v2  ;;  %v1167_v2 = vld [vmem:[%s3041_s1 + $0x560] sm:$0xff] }
 0x233   :  { %v955_v12 = vmax.f32 %v902_v24, %v935_v18  ;;  %v1117_v24 = vld [vmem:[%s3041_s1 + $0x3d0] sm:$0xff]  ;;  %v1118_v18 = vld [vmem:[%s3041_s1 + $0x3d8] sm:$0xff] }
 0x234   :  { %v827_v56 = vpop.f32.mrf.mxu2  ;;  %v904_v49 = vpop.f32.mrf.mxu3  ;;  %1267 = vmatpush.msra.mxu3 %v1117_v24  ;;  %1287 = vmatpush.msra.mxu2 %v1118_v18  ;;  %v1142_v24 = vld [vmem:[%s3041_s1 + $0x498] sm:$0xff]  ;;  %v1139_v18 = vld [vmem:[%s3041_s1 + $0x480] sm:$0xff] }
 0x235   :  { %v828_v60 = vadd.f32 %v827_v56, %v2378_v42  ;;  %v965_v47 = vmax.f32 %v945_v25, %v955_v12  ;;  %v949_v25 = vmax.f32 %v2387_v53, %v929_v41  ;;  %v1146_v41 = vld [vmem:[%s3041_s1 + $0x4b8] sm:$0xff] }
 0x237   :  { %v905_v13 = vadd.f32 %v904_v49, %v828_v60  ;;  %1716 = vmatmul.msk.f32.gmra.mxu2 %vm988_vm3, %v965_v47  ;;  %v930_v60 = vmul.f32 0.01, %v2393_v48 }
 0x239   :  { %v936_v44 = vmul.f32 0.01, %v905_v13  ;;  %v950_v51 = vmax.f32 %v2393_v48, %v930_v60  ;;  %v1115_v48 = vld [vmem:[%s3041_s1 + $0x3c0] sm:$0xff]  ;;  %v1134_v60 = vld [vmem:[%s3041_s1 + $0x458] sm:$0xff] }
 0x23a   :  { %1268 = vmatpush.msra.mxu3 %v1115_v48 }
 0x23b   :  { %v956_v59 = vmax.f32 %v905_v13, %v936_v44 }
 0x23c   :  { %v830_v55 = vpop.f32.mrf.mxu2  ;;  %v907_v31 = vpop.f32.mrf.mxu3  ;;  %1269 = vmatpush.msra.mxu3 %v1113_v6  ;;  %v1191_v6 = vld [vmem:[%s3041_s1 + $0x620] sm:$0xff] }
 0x23d   :  { %v966_v32 = vmax.f32 %v946_v9, %v956_v59  ;;  %v831_v5 = vadd.f32 %v830_v55, %v2378_v42  ;;  %v931_v59 = vmul.f32 0.01, %v2401_v61 }
 0x23f   :  { %v908_v15 = vadd.f32 %v907_v31, %v831_v5  ;;  %1717 = vmatmul.msk.f32.gmra.mxu2 %vm988_vm3, %v966_v32  ;;  %v951_v32 = vmax.f32 %v2401_v61, %v931_v59  ;;  %v1114_v61 = vld [vmem:[%s3041_s1 + $0x3b8] sm:$0xff] }
 0x241   :  { %v937_v57 = vmul.f32 0.01, %v908_v15 }
 0x243   :  { %v957_v43 = vmax.f32 %v908_v15, %v937_v57  ;;  %v1111_v15 = vld [vmem:[%s3041_s1 + $0x3a0] sm:$0xff]  ;;  %v1112_v57 = vld [vmem:[%s3041_s1 + $0x3a8] sm:$0xff] }
 0x244   :  { %v833_v26 = vpop.f32.mrf.mxu2  ;;  %v910_v58 = vpop.f32.mrf.mxu3  ;;  %1270 = vmatpush.msra.mxu3 %v1111_v15  ;;  %v1228_v15 = vld [vmem:[%s3041_s1 + $0x748] sm:$0xff] }
 0x245   :  { %v967_v3 = vmax.f32 %v947_v16, %v957_v43  ;;  %v834_v27 = vadd.f32 %v833_v26, %v2378_v42  ;;  %v1109_v16 = vld [vmem:[%s3041_s1 + $0x390] sm:$0xff]  ;;  %v1107_v43 = vld [vmem:[%s3041_s1 + $0x380] sm:$0xff]  ;;  %v1108_v26 = vld [vmem:[%s3041_s1 + $0x388] sm:$0xff] }
 0x246   :  { %1271 = vmatpush.msra.mxu3 %v1109_v16  ;;  %v1189_v16 = vld [vmem:[%s3041_s1 + $0x610] sm:$0xff] }
 0x247   :  { %v911_v36 = vadd.f32 %v910_v58, %v834_v27  ;;  %1708 = vmatmul.msk.f32.vlgmr.msrb.gmra.mxu3 %vm988_vm3, %v967_v3  ;;  %v1105_v58 = vld [vmem:[%s3041_s1 + $0x370] sm:$0xff]  ;;  %v1106_v3 = vld [vmem:[%s3041_s1 + $0x378] sm:$0xff]  ;;  %v1103_v27 = vld [vmem:[%s3041_s1 + $0x360] sm:$0xff] }
 0x248   :  { %1272 = vmatpush.msra.mxu3 %v1107_v43 }
 0x249   :  { %v938_v33 = vmul.f32 0.01, %v911_v36 }
 0x24a   :  { %1273 = vmatpush.msra.mxu3 %v1105_v58  ;;  %v1187_v58 = vld [vmem:[%s3041_s1 + $0x600] sm:$0xff] }
 0x24b   :  { %v958_v34 = vmax.f32 %v911_v36, %v938_v33  ;;  %v1102_v36 = vld [vmem:[%s3041_s1 + $0x358] sm:$0xff]  ;;  %v1160_v33 = vld [vmem:[%s3041_s1 + $0x528] sm:$0xff] }
 0x24c   :  { %v836_v21 = vpop.f32.mrf.mxu2  ;;  %v913_v39 = vpop.f32.mrf.mxu3  ;;  %1274 = vmatpush.msra.mxu3 %v1103_v27 }
 0x24d   :  { %v837_v8 = vadd.f32 %v836_v21, %v2378_v42  ;;  %v968_v52 = vmax.f32 %v948_v20, %v958_v34  ;;  %v1155_v20 = vld [vmem:[%s3041_s1 + $0x500] sm:$0xff]  ;;  %v1156_v34 = vld [vmem:[%s3041_s1 + $0x508] sm:$0xff]  ;;  %v1154_v21 = vld [vmem:[%s3041_s1 + $0x4f8] sm:$0xff] }
 0x24e   :  { %1275 = vmatpush.msra.mxu3 %v1101_v7  ;;  %v1186_v7 = vld [vmem:[%s3041_s1 + $0x5f8] sm:$0xff] }
 0x24f   :  { %v914_v1 = vadd.f32 %v913_v39, %v837_v8  ;;  %1709 = vmatmul.msk.f32.gmra.mxu3 %vm988_vm3, %v968_v52  ;;  %v1151_v39 = vld [vmem:[%s3041_s1 + $0x4e0] sm:$0xff]  ;;  %v1150_v8 = vld [vmem:[%s3041_s1 + $0x4d8] sm:$0xff] }
 0x250   :  { %1276 = vmatpush.msra.mxu3 %v1099_v38  ;;  %v1147_v52 = vld [vmem:[%s3041_s1 + $0x4c0] sm:$0xff] }
 0x251   :  { %v939_v50 = vmul.f32 0.01, %v914_v1  ;;  %v1183_v38 = vld [vmem:[%s3041_s1 + $0x5e0] sm:$0xff] }
 0x252   :  { %1308 = vmatpush.msrb.mxu3 %v1161_v62  ;;  %v1181_v62 = vld [vmem:[%s3041_s1 + $0x5d0] sm:$0xff] }
 0x253   :  { %v959_v11 = vmax.f32 %v914_v1, %v939_v50  ;;  %v1143_v1 = vld [vmem:[%s3041_s1 + $0x4a0] sm:$0xff]  ;;  %v1141_v50 = vld [vmem:[%s3041_s1 + $0x490] sm:$0xff] }
 0x254   :  { %v839_v12 = vpop.f32.mrf.mxu2  ;;  %v916_v30 = vpop.f32.mrf.mxu3  ;;  %1309 = vmatpush.msrb.mxu3 %v1159_v23  ;;  %v1180_v23 = vld [vmem:[%s3041_s1 + $0x5c8] sm:$0xff] }
 0x255   :  { %v840_v56 = vadd.f32 %v839_v12, %v2378_v42  ;;  %v969_v49 = vmax.f32 %v949_v25, %v959_v11  ;;  %v1140_v25 = vld [vmem:[%s3041_s1 + $0x488] sm:$0xff]  ;;  %v1137_v11 = vld [vmem:[%s3041_s1 + $0x470] sm:$0xff]  ;;  %v1138_v12 = vld [vmem:[%s3041_s1 + $0x478] sm:$0xff] }
 0x256   :  { %1310 = vmatpush.msrb.mxu3 %v1157_v63  ;;  %v1177_v63 = vld [vmem:[%s3041_s1 + $0x5b0] sm:$0xff] }
 0x257   :  { %v917_v47 = vadd.f32 %v916_v30, %v840_v56  ;;  %1710 = vmatmul.msk.f32.gmra.mxu3 %vm988_vm3, %v969_v49  ;;  %v1135_v30 = vld [vmem:[%s3041_s1 + $0x460] sm:$0xff]  ;;  %v1136_v56 = vld [vmem:[%s3041_s1 + $0x468] sm:$0xff]  ;;  %v1133_v49 = vld [vmem:[%s3041_s1 + $0x450] sm:$0xff] }
 0x258   :  { %1311 = vmatpush.msrb.mxu3 %v1155_v20 }
 0x259   :  { %v940_v10 = vmul.f32 0.01, %v917_v47 }
 0x25a   :  { %1312 = vmatpush.msrb.mxu3 %v1153_v28  ;;  %v1176_v28 = vld [vmem:[%s3041_s1 + $0x5a8] sm:$0xff] }
 0x25b   :  { %v960_v13 = vmax.f32 %v917_v47, %v940_v10  ;;  %v1131_v47 = vld [vmem:[%s3041_s1 + $0x440] sm:$0xff]  ;;  %v1132_v10 = vld [vmem:[%s3041_s1 + $0x448] sm:$0xff] }
 0x25c   :  { %v842_v44 = vpop.f32.mrf.mxu2  ;;  %v919_v54 = vpop.f32.mrf.mxu3  ;;  %1313 = vmatpush.msrb.mxu3 %v1151_v39  ;;  %v1173_v39 = vld [vmem:[%s3041_s1 + $0x590] sm:$0xff] }
 0x25d   :  { %v843_v53 = vadd.f32 %v842_v44, %v2378_v42  ;;  %v970_v9 = vmax.f32 %v950_v51, %v960_v13  ;;  %v1116_v42 = vld [vmem:[%s3041_s1 + $0x3c8] sm:$0xff] }
 0x25e   :  { %1288 = vmatpush.msra.mxu2 %v1116_v42  ;;  %1314 = vmatpush.msrb.mxu3 %v1149_v29  ;;  %v1232_v51 = vld [vmem:[%s3041_s1 + $0x768] sm:$0xff]  ;;  %v1171_v29 = vld [vmem:[%s3041_s1 + $0x580] sm:$0xff] }
 0x25f   :  { %v920_v55 = vadd.f32 %v919_v54, %v843_v53  ;;  %1711 = vmatmul.msk.f32.gmra.mxu3 %vm988_vm3, %v970_v9  ;;  %1467 = vmatpush.msrb.mxu0 %v1232_v51  ;;  %v2676_v53 = vld [vmem:[%s3041_s1 + $0x330] ss:$0 sm:$0xff]  ;;  %v1223_v51 = vld [vmem:[%s3041_s1 + $0x720] sm:$0xff] }
 0x260   :  { %1289 = vmatpush.msra.mxu2 %v1114_v61  ;;  %1315 = vmatpush.msrb.mxu3 %v1147_v52  ;;  %v1192_v61 = vld [vmem:[%s3041_s1 + $0x628] sm:$0xff] }
 0x261   :  { %v941_v31 = vmul.f32 0.01, %v920_v55 }
 0x262   :  { %1290 = vmatpush.msra.mxu2 %v1112_v57  ;;  %1316 = vmatpush.msrb.mxu3 %v1145_v40  ;;  %v1170_v40 = vld [vmem:[%s3041_s1 + $0x578] sm:$0xff] }
 0x263   :  { %v961_v5 = vmax.f32 %v920_v55, %v941_v31  ;;  %v1230_v31 = vld [vmem:[%s3041_s1 + $0x758] sm:$0xff] }
 0x264   :  { %1291 = vmatpush.msra.mxu2 %v1110_v19  ;;  %1317 = vmatpush.msrb.mxu3 %v1143_v1  ;;  %v1190_v19 = vld [vmem:[%s3041_s1 + $0x618] sm:$0xff] }
 0x265   :  { %v971_v14 = vmax.f32 %v951_v32, %v961_v5  ;;  %v1193_v5 = vld [vmem:[%s3041_s1 + $0x630] sm:$0xff]  ;;  %1468 = vmatpush.msrb.mxu0 %v1230_v31  ;;  %v1218_v31 = vld [vmem:[%s3041_s1 + $0x6f8] sm:$0xff] }
 0x266   :  { %1292 = vmatpush.msra.mxu2 %v1108_v26  ;;  %1318 = vmatpush.msrb.mxu3 %v1141_v50  ;;  %v1168_v50 = vld [vmem:[%s3041_s1 + $0x568] sm:$0xff] }
 0x267   :  { %1712 = vmatmul.msk.f32.gmra.mxu3 %vm988_vm3, %v971_v14  ;;  %v1194_v14 = vld [vmem:[%s3041_s1 + $0x638] sm:$0xff]  ;;  %1469 = vmatpush.msrb.mxu0 %v1228_v15 }
 0x268   :  { %1293 = vmatpush.msra.mxu2 %v1106_v3  ;;  %1319 = vmatpush.msrb.mxu3 %v1139_v18  ;;  %v1188_v3 = vld [vmem:[%s3041_s1 + $0x608] sm:$0xff]  ;;  %v1210_v15 = vld [vmem:[%s3041_s1 + $0x6b8] sm:$0xff] }
 0x26a   :  { %1294 = vmatpush.msra.mxu2 %v1104_v45  ;;  %1320 = vmatpush.msrb.mxu3 %v1137_v11  ;;  %v1185_v45 = vld [vmem:[%s3041_s1 + $0x5f0] sm:$0xff]  ;;  %v1166_v11 = vld [vmem:[%s3041_s1 + $0x558] sm:$0xff] }
 0x26c   :  { %1295 = vmatpush.msra.mxu2 %v1102_v36  ;;  %1321 = vmatpush.msrb.mxu3 %v1135_v30  ;;  %v1163_v30 = vld [vmem:[%s3041_s1 + $0x540] sm:$0xff] }
 0x26e   :  { %1296 = vmatpush.msra.mxu2 %v1100_v37  ;;  %1322 = vmatpush.msrb.mxu3 %v1133_v49  ;;  %v1184_v37 = vld [vmem:[%s3041_s1 + $0x5e8] sm:$0xff] }
 0x270   :  { %1328 = vmatpush.msrb.mxu2 %v1162_v46  ;;  %1323 = vmatpush.msrb.mxu3 %v1131_v47  ;;  %v1182_v46 = vld [vmem:[%s3041_s1 + $0x5d8] sm:$0xff]  ;;  %v1225_v47 = vld [vmem:[%s3041_s1 + $0x730] sm:$0xff] }
 0x272   :  { %1329 = vmatpush.msrb.mxu2 %v1160_v33 }
 0x274   :  { %1330 = vmatpush.msrb.mxu2 %v1158_v0  ;;  %v1178_v0 = vld [vmem:[%s3041_s1 + $0x5b8] sm:$0xff] }
 0x276   :  { %1331 = vmatpush.msrb.mxu2 %v1156_v34  ;;  %v1175_v34 = vld [vmem:[%s3041_s1 + $0x5a0] sm:$0xff] }
 0x278   :  { %1332 = vmatpush.msrb.mxu2 %v1154_v21 }
 0x27a   :  { %1333 = vmatpush.msrb.mxu2 %v1152_v17  ;;  %v1174_v17 = vld [vmem:[%s3041_s1 + $0x598] sm:$0xff] }
 0x27c   :  { %1334 = vmatpush.msrb.mxu2 %v1150_v8  ;;  %v1172_v8 = vld [vmem:[%s3041_s1 + $0x588] sm:$0xff] }
 0x27e   :  { %1335 = vmatpush.msrb.mxu2 %v1148_v35  ;;  %v1169_v35 = vld [vmem:[%s3041_s1 + $0x570] sm:$0xff] }
 0x280   :  { %1336 = vmatpush.msrb.mxu2 %v1146_v41 }
 0x282   :  { %1337 = vmatpush.msrb.mxu2 %v1144_v4 }
 0x284   :  { %1338 = vmatpush.msrb.mxu2 %v1142_v24 }
 0x286   :  { %1339 = vmatpush.msrb.mxu2 %v1140_v25  ;;  %v1165_v25 = vld [vmem:[%s3041_s1 + $0x550] sm:$0xff] }
 0x288   :  { %1340 = vmatpush.msrb.mxu2 %v1138_v12 }
 0x28a   :  { %1341 = vmatpush.msrb.mxu2 %v1136_v56  ;;  %v1164_v56 = vld [vmem:[%s3041_s1 + $0x548] sm:$0xff] }
 0x28c   :  { %1342 = vmatpush.msrb.mxu2 %v1134_v60 }
 0x28e   :  { %1343 = vmatpush.msrb.mxu2 %v1132_v10  ;;  %v1226_v10 = vld [vmem:[%s3041_s1 + $0x738] sm:$0xff] }
 0x2a2   :  { %v1068_v13 = vpop.f32.mrf.mxu2 }
 0x2aa   :  { %v1071_v54 = vpop.f32.mrf.mxu2 }
 0x2b2   :  { %v1074_v43 = vpop.f32.mrf.mxu2 }
 0x2ba   :  { %v2734_v33 = vpop.f32.mrf.mxu2 }
 0x2c2   :  { %v1080_v41 = vpop.f32.mrf.mxu2 }
 0x2ca   :  { %v1021_v44 = vpop.f32.mrf.mxu3 }
 0x2cb   :  { %v1069_v9 = vadd.f32 %v1068_v13, %v1021_v44  ;;  %v1224_v13 = vld [vmem:[%s3041_s1 + $0x728] sm:$0xff]  ;;  %v1221_v44 = vld [vmem:[%s3041_s1 + $0x710] sm:$0xff] }
 0x2cd   :  { %v1084_v59 = vadd.f32 %v2676_v53, %v1069_v9  ;;  %v1222_v9 = vld [vmem:[%s3041_s1 + $0x718] sm:$0xff] }
 0x2cf   :  { %v1089_v55 = vmul.f32 0.01, %v1084_v59 }
 0x2d1   :  { %v1094_v32 = vmax.f32 %v1084_v59, %v1089_v55  ;;  %v1220_v59 = vld [vmem:[%s3041_s1 + $0x708] sm:$0xff]  ;;  %v1217_v55 = vld [vmem:[%s3041_s1 + $0x6f0] sm:$0xff] }
 0x2d2   :  { %v1024_v48 = vpop.f32.mrf.mxu3 }
 0x2d3   :  { %v1072_v42 = vadd.f32 %v1071_v54, %v1024_v48  ;;  %1277 = vmatmul.f32.vlgmr.msra.gmra.mxu3 %v1094_v32  ;;  %1297 = vmatmul.f32.vlgmr.msra.gmra.mxu2 %v1094_v32  ;;  %v1219_v54 = vld [vmem:[%s3041_s1 + $0x700] sm:$0xff]  ;;  %v1214_v48 = vld [vmem:[%s3041_s1 + $0x6d8] sm:$0xff] }
 0x2d4   :  { %1350 = vmatpush.msra.mxu3 %v1193_v5  ;;  %1370 = vmatpush.msra.mxu2 %v1194_v14  ;;  %v1215_v32 = vld [vmem:[%s3041_s1 + $0x6e0] sm:$0xff]  ;;  %v1216_v5 = vld [vmem:[%s3041_s1 + $0x6e8] sm:$0xff]  ;;  %v1213_v14 = vld [vmem:[%s3041_s1 + $0x6d0] sm:$0xff] }
 0x2d5   :  { %v1085_v57 = vadd.f32 %v2676_v53, %v1072_v42  ;;  %v1211_v42 = vld [vmem:[%s3041_s1 + $0x6c0] sm:$0xff] }
 0x2d6   :  { %1351 = vmatpush.msra.mxu3 %v1191_v6  ;;  %1371 = vmatpush.msra.mxu2 %v1192_v61  ;;  %v1212_v6 = vld [vmem:[%s3041_s1 + $0x6c8] sm:$0xff]  ;;  %v1209_v61 = vld [vmem:[%s3041_s1 + $0x6b0] sm:$0xff] }
 0x2d7   :  { %v1090_v26 = vmul.f32 0.01, %v1085_v57 }
 0x2d8   :  { %1352 = vmatpush.msra.mxu3 %v1189_v16  ;;  %1372 = vmatpush.msra.mxu2 %v1190_v19  ;;  %v1208_v16 = vld [vmem:[%s3041_s1 + $0x6a8] sm:$0xff] }
 0x2d9   :  { %v1095_v27 = vmax.f32 %v1085_v57, %v1090_v26  ;;  %v1207_v57 = vld [vmem:[%s3041_s1 + $0x6a0] sm:$0xff]  ;;  %v1206_v26 = vld [vmem:[%s3041_s1 + $0x698] sm:$0xff] }
 0x2da   :  { %1353 = vmatpush.msra.mxu3 %v1187_v58  ;;  %1373 = vmatpush.msra.mxu2 %v1188_v3  ;;  %v1027_v36 = vpop.f32.mrf.mxu3  ;;  %v1203_v58 = vld [vmem:[%s3041_s1 + $0x680] sm:$0xff]  ;;  %v1204_v3 = vld [vmem:[%s3041_s1 + $0x688] sm:$0xff] }
 0x2db   :  { %1324 = vmatmul.f32.vlgmr.msrb.gmra.mxu3 %v1095_v27  ;;  %1344 = vmatmul.f32.vlgmr.msrb.gmra.mxu2 %v1095_v27  ;;  %v1075_v21 = vadd.f32 %v1074_v43, %v1027_v36  ;;  %v1205_v43 = vld [vmem:[%s3041_s1 + $0x690] sm:$0xff]  ;;  %v1199_v36 = vld [vmem:[%s3041_s1 + $0x660] sm:$0xff] }
 0x2dc   :  { %1354 = vmatpush.msra.mxu3 %v1185_v45  ;;  %1374 = vmatpush.msra.mxu2 %v1186_v7  ;;  %v1201_v45 = vld [vmem:[%s3041_s1 + $0x670] sm:$0xff]  ;;  %v1202_v7 = vld [vmem:[%s3041_s1 + $0x678] sm:$0xff] }
 0x2dd   :  { %v1086_v52 = vadd.f32 %v2676_v53, %v1075_v21  ;;  %v1245_v21 = vld [vmem:[%s3041_s1 + $0x7d0] sm:$0xff] }
 0x2de   :  { %1355 = vmatpush.msra.mxu3 %v1183_v38  ;;  %1375 = vmatpush.msra.mxu2 %v1184_v37  ;;  %v1200_v38 = vld [vmem:[%s3041_s1 + $0x668] sm:$0xff]  ;;  %v1197_v37 = vld [vmem:[%s3041_s1 + $0x650] sm:$0xff] }
 0x2df   :  { %v1091_v24 = vmul.f32 0.01, %v1086_v52 }
 0x2e0   :  { %1356 = vmatpush.msra.mxu3 %v1181_v62  ;;  %1376 = vmatpush.msra.mxu2 %v1182_v46  ;;  %v1198_v62 = vld [vmem:[%s3041_s1 + $0x658] sm:$0xff]  ;;  %v1195_v46 = vld [vmem:[%s3041_s1 + $0x640] sm:$0xff] }
 0x2e1   :  { %v1096_v49 = vmax.f32 %v1086_v52, %v1091_v24  ;;  %v1235_v52 = vld [vmem:[%s3041_s1 + $0x780] sm:$0xff]  ;;  %v1480_v24 = vld [vmem:[%s3041_s1 + $0x870] sm:$0xff] }
 0x2e2   :  { %1357 = vmatpush.msra.mxu3 %v1179_v22  ;;  %1377 = vmatpush.msra.mxu2 %v1180_v23  ;;  %v2742_v20 = vpop.f32.mrf.mxu3  ;;  %v1196_v22 = vld [vmem:[%s3041_s1 + $0x648] sm:$0xff] }
 0x2e3   :  { %v1078_v19 = vadd.f32 %v2734_v33, %v2742_v20  ;;  %v1257_v33 = vld [vmem:[%s3041_s1 + $0x830] sm:$0xff]  ;;  %v1251_v20 = vld [vmem:[%s3041_s1 + $0x800] sm:$0xff] }
 0x2e4   :  { %1358 = vmatpush.msra.mxu3 %v1177_v63  ;;  %1378 = vmatpush.msra.mxu2 %v1178_v0  ;;  %v1255_v63 = vld [vmem:[%s3041_s1 + $0x820] sm:$0xff]  ;;  %v1253_v0 = vld [vmem:[%s3041_s1 + $0x810] sm:$0xff] }
 0x2e5   :  { %v1087_v27 = vadd.f32 %v2676_v53, %v1078_v19  ;;  %v1535_v19 = vld [vmem:[%s3041_s1 + $0x8f0] sm:$0xff] }
 0x2e6   :  { %1359 = vmatpush.msra.mxu3 %v1175_v34  ;;  %1379 = vmatpush.msra.mxu2 %v1176_v28  ;;  %v1249_v34 = vld [vmem:[%s3041_s1 + $0x7f0] sm:$0xff]  ;;  %v1247_v28 = vld [vmem:[%s3041_s1 + $0x7e0] sm:$0xff] }
 0x2e8   :  { %1360 = vmatpush.msra.mxu3 %v1173_v39  ;;  %1380 = vmatpush.msra.mxu2 %v1174_v17  ;;  %v1243_v39 = vld [vmem:[%s3041_s1 + $0x7c0] sm:$0xff]  ;;  %v1241_v17 = vld [vmem:[%s3041_s1 + $0x7b0] sm:$0xff] }
 0x2ea   :  { %1361 = vmatpush.msra.mxu3 %v1171_v29  ;;  %1381 = vmatpush.msra.mxu2 %v1172_v8  ;;  %v1033_v1 = vpop.f32.mrf.mxu3  ;;  %v1239_v29 = vld [vmem:[%s3041_s1 + $0x7a0] sm:$0xff]  ;;  %v1237_v8 = vld [vmem:[%s3041_s1 + $0x790] sm:$0xff] }
 0x2eb   :  { %v1081_v4 = vadd.f32 %v1080_v41, %v1033_v1  ;;  %v1229_v41 = vld [vmem:[%s3041_s1 + $0x750] sm:$0xff]  ;;  %v1227_v1 = vld [vmem:[%s3041_s1 + $0x740] sm:$0xff] }
 0x2ec   :  { %1362 = vmatpush.msra.mxu3 %v1169_v35  ;;  %1382 = vmatpush.msra.mxu2 %v1170_v40  ;;  %v1233_v35 = vld [vmem:[%s3041_s1 + $0x770] sm:$0xff]  ;;  %v1231_v40 = vld [vmem:[%s3041_s1 + $0x760] sm:$0xff] }
 0x2ed   :  { %v1088_v18 = vadd.f32 %v2676_v53, %v1081_v4  ;;  %v1092_v53 = vmul.f32 0.01, %v1087_v27  ;;  %v1550_v4 = vld [vmem:[%s3041_s1 + $0x9e0] sm:$0xff] }
 0x2ee   :  { %1363 = vmatpush.msra.mxu3 %v1167_v2  ;;  %1383 = vmatpush.msra.mxu2 %v1168_v50  ;;  %v1549_v2 = vld [vmem:[%s3041_s1 + $0x9d0] sm:$0xff]  ;;  %v1481_v50 = vld [vmem:[%s3041_s1 + $0x880] sm:$0xff] }
 0x2ef   :  { %v1093_v12 = vmul.f32 0.01, %v1088_v18  ;;  %v1097_v23 = vmax.f32 %v1087_v27, %v1092_v53  ;;  %1578 = vmatpush.msrb.mxu1 %v1550_v4 }
 0x2f0   :  { %1364 = vmatpush.msra.mxu3 %v1165_v25  ;;  %1384 = vmatpush.msra.mxu2 %v1166_v11  ;;  %v1548_v25 = vld [vmem:[%s3041_s1 + $0x9c0] sm:$0xff]  ;;  %v1478_v11 = vld [vmem:[%s3041_s1 + $0x850] sm:$0xff] }
 0x2f1   :  { %v2788_v60 = vmax.f32 %v1088_v18, %v1093_v12  ;;  %1579 = vmatpush.msrb.mxu1 %v1549_v2  ;;  %v1479_v18 = vld [vmem:[%s3041_s1 + $0x860] sm:$0xff]  ;;  %v1547_v12 = vld [vmem:[%s3041_s1 + $0x9b0] sm:$0xff] }
 0x2f2   :  { %1365 = vmatpush.msra.mxu3 %v1163_v30  ;;  %1385 = vmatpush.msra.mxu2 %v1164_v56  ;;  %v1546_v30 = vld [vmem:[%s3041_s1 + $0x9a0] sm:$0xff] }
 0x2f3   :  { %1366 = vmatmul.f32.vlgmr.msra.gmra.mxu3 %v1096_v49  ;;  %1386 = vmatmul.f32.vlgmr.msra.gmra.mxu2 %v1096_v49  ;;  %v1545_v49 = vld [vmem:[%s3041_s1 + $0x990] sm:$0xff] }
 0x2f4   :  { %1392 = vmatpush.msrb.mxu3 %v1225_v47  ;;  %1412 = vmatpush.msrb.mxu2 %v1226_v10  ;;  %v1543_v47 = vld [vmem:[%s3041_s1 + $0x970] sm:$0xff]  ;;  %v1542_v10 = vld [vmem:[%s3041_s1 + $0x960] sm:$0xff] }
 0x2f5   :  { %1470 = vmatmul.f32.vlgmr.msrb.gmra.mxu0 %v2788_v60  ;;  %1580 = vmatpush.msrb.mxu1 %v1548_v25 }
 0x2f6   :  { %1393 = vmatpush.msrb.mxu3 %v1223_v51  ;;  %1413 = vmatpush.msrb.mxu2 %v1224_v13  ;;  %v1541_v51 = vld [vmem:[%s3041_s1 + $0x950] sm:$0xff] }
 0x2f7   :  { %1581 = vmatpush.msrb.mxu1 %v1547_v12 }
 0x2f8   :  { %1394 = vmatpush.msrb.mxu3 %v1221_v44  ;;  %1414 = vmatpush.msrb.mxu2 %v1222_v9  ;;  %v1540_v44 = vld [vmem:[%s3041_s1 + $0x940] sm:$0xff]  ;;  %v1539_v9 = vld [vmem:[%s3041_s1 + $0x930] sm:$0xff] }
 0x2f9   :  { %1582 = vmatpush.msrb.mxu1 %v1546_v30 }
 0x2fa   :  { %1395 = vmatpush.msrb.mxu3 %v1219_v54  ;;  %1415 = vmatpush.msrb.mxu2 %v1220_v59  ;;  %v1718_v54 = vld [vmem:[%s3041_s1 + $0x840] ss:$8 sm:$0x3] }
 0x2fb   :  { %1583 = vmatpush.msrb.mxu1 %v1545_v49  ;;  %v1303_v59 = vperm.slane %v1718_v54, 1  ;;  %v1302_v27 = vperm.slane %v1718_v54, 0 }
 0x2fc   :  { %1396 = vmatpush.msrb.mxu3 %v1217_v55  ;;  %1416 = vmatpush.msrb.mxu2 %v1218_v31 }
 0x2fe   :  { %1397 = vmatpush.msrb.mxu3 %v1215_v32  ;;  %1417 = vmatpush.msrb.mxu2 %v1216_v5 }
 0x300   :  { %1398 = vmatpush.msrb.mxu3 %v1213_v14  ;;  %1418 = vmatpush.msrb.mxu2 %v1214_v48  ;;  %v1538_v48 = vld [vmem:[%s3041_s1 + $0x920] sm:$0xff] }
 0x302   :  { %1399 = vmatpush.msrb.mxu3 %v1211_v42  ;;  %1419 = vmatpush.msrb.mxu2 %v1212_v6 }
 0x304   :  { %1400 = vmatpush.msrb.mxu3 %v1209_v61  ;;  %1420 = vmatpush.msrb.mxu2 %v1210_v15  ;;  %v1537_v61 = vld [vmem:[%s3041_s1 + $0x910] sm:$0xff] }
 0x306   :  { %1401 = vmatpush.msrb.mxu3 %v1207_v57  ;;  %1421 = vmatpush.msrb.mxu2 %v1208_v16  ;;  %v1536_v16 = vld [vmem:[%s3041_s1 + $0x900] sm:$0xff] }
 0x308   :  { %1402 = vmatpush.msrb.mxu3 %v1205_v43  ;;  %1422 = vmatpush.msrb.mxu2 %v1206_v26  ;;  %v1510_v43 = vld [vmem:[%s3041_s1 + $0x8d0] sm:$0xff]  ;;  %v1509_v26 = vld [vmem:[%s3041_s1 + $0x8c0] sm:$0xff] }
 0x30a   :  { %1403 = vmatpush.msrb.mxu3 %v1203_v58  ;;  %1423 = vmatpush.msrb.mxu2 %v1204_v3 }
 0x30c   :  { %1404 = vmatpush.msrb.mxu3 %v1201_v45  ;;  %1424 = vmatpush.msrb.mxu2 %v1202_v7 }
 0x30e   :  { %1405 = vmatpush.msrb.mxu3 %v1199_v36  ;;  %1425 = vmatpush.msrb.mxu2 %v1200_v38 }
 0x310   :  { %1406 = vmatpush.msrb.mxu3 %v1197_v37  ;;  %1426 = vmatpush.msrb.mxu2 %v1198_v62 }
 0x312   :  { %1407 = vmatpush.msrb.mxu3 %v1195_v46  ;;  %1427 = vmatpush.msrb.mxu2 %v1196_v22 }
 0x313   :  { %1408 = vmatmul.f32.vlgmr.msrb.gmra.mxu3 %v1097_v23  ;;  %1428 = vmatmul.f32.vlgmr.msrb.gmra.mxu2 %v1097_v23  ;;  %v1508_v23 = vld [vmem:[%s3041_s1 + $0x8b0] sm:$0xff] }
 0x314   :  { %1434 = vmatpush.msra.mxu3 %v1257_v33  ;;  %1498 = vmatpush.msra.mxu2 %v1481_v50  ;;  %v1507_v33 = vld [vmem:[%s3041_s1 + $0x8a0] sm:$0xff] }
 0x316   :  { %1435 = vmatpush.msra.mxu3 %v1255_v63  ;;  %1499 = vmatpush.msra.mxu2 %v1480_v24  ;;  %v1554_v63 = vld [vmem:[%s3041_s1 + $0xa20] sm:$0xff] }
 0x318   :  { %1436 = vmatpush.msra.mxu3 %v1253_v0  ;;  %1500 = vmatpush.msra.mxu2 %v1479_v18  ;;  %v1553_v0 = vld [vmem:[%s3041_s1 + $0xa10] sm:$0xff] }
 0x31a   :  { %1437 = vmatpush.msra.mxu3 %v1251_v20  ;;  %1501 = vmatpush.msra.mxu2 %v1478_v11  ;;  %v1482_v20 = vld [vmem:[%s3041_s1 + $0x890] ss:$0 sm:$0xff] }
 0x31c   :  { %1438 = vmatpush.msra.mxu3 %v1249_v34  ;;  %1527 = vmatpush.msrb.mxu2 %v1510_v43  ;;  %v1552_v34 = vld [vmem:[%s3041_s1 + $0xa00] sm:$0xff] }
 0x31e   :  { %1439 = vmatpush.msra.mxu3 %v1247_v28  ;;  %1528 = vmatpush.msrb.mxu2 %v1509_v26 }
 0x320   :  { %1440 = vmatpush.msra.mxu3 %v1245_v21  ;;  %1529 = vmatpush.msrb.mxu2 %v1508_v23 }
 0x322   :  { %1441 = vmatpush.msra.mxu3 %v1243_v39  ;;  %1530 = vmatpush.msrb.mxu2 %v1507_v33 }
 0x324   :  { %1442 = vmatpush.msra.mxu3 %v1241_v17  ;;  %v1551_v17 = vld [vmem:[%s3041_s1 + $0x9f0] sm:$0xff] }
 0x326   :  { %1443 = vmatpush.msra.mxu3 %v1239_v29  ;;  %v1511_v29 = vld [vmem:[%s3041_s1 + $0x8e0] ss:$0 sm:$0xff] }
 0x328   :  { %1444 = vmatpush.msra.mxu3 %v1237_v8 }
 0x32a   :  { %1445 = vmatpush.msra.mxu3 %v1235_v52 }
 0x32c   :  { %1446 = vmatpush.msra.mxu3 %v1233_v35 }
 0x32e   :  { %1447 = vmatpush.msra.mxu3 %v1231_v40 }
 0x330   :  { %1448 = vmatpush.msra.mxu3 %v1229_v41  ;;  %v1598_v41 = vld [vmem:[%s3041_s1 + $0xa30] ss:$0 sm:$0xff] }
 0x332   :  { %1449 = vmatpush.msra.mxu3 %v1227_v1 }
 0x333   :  { %1450 = vmatmul.f32.vlgmr.msra.gmra.mxu3 %v2788_v60  ;;  %v1544_v60 = vld [vmem:[%s3041_s1 + $0x980] sm:$0xff] }
 0x334   :  { %1584 = vmatpush.msrb.mxu1 %v1544_v60  ;;  %1570 = vmatpush.msrb.mxu3 %v1554_v63 }
 0x336   :  { %1585 = vmatpush.msrb.mxu1 %v1543_v47  ;;  %1571 = vmatpush.msrb.mxu3 %v1553_v0 }
 0x338   :  { %1586 = vmatpush.msrb.mxu1 %v1542_v10  ;;  %1572 = vmatpush.msrb.mxu3 %v1552_v34 }
 0x33a   :  { %1587 = vmatpush.msrb.mxu1 %v1541_v51  ;;  %1573 = vmatpush.msrb.mxu3 %v1551_v17 }
 0x33c   :  { %1588 = vmatpush.msrb.mxu1 %v1540_v44 }
 0x33e   :  { %1589 = vmatpush.msrb.mxu1 %v1539_v9 }
 0x340   :  { %1590 = vmatpush.msrb.mxu1 %v1538_v48 }
 0x342   :  { %1591 = vmatpush.msrb.mxu1 %v1537_v61 }
 0x344   :  { %1592 = vmatpush.msrb.mxu1 %v1536_v16 }
 0x346   :  { %1593 = vmatpush.msrb.mxu1 %v1535_v19 }
 0x356   :  { %v1298_v56 = vpop.f32.mrf.mxu2  ;;  %v1278_v5 = vpop.f32.mrf.mxu3 }
 0x357   :  { %v1307_v31 = vadd.f32 %v1303_v59, %v1298_v56  ;;  %v1306_v7 = vadd.f32 %v1302_v27, %v1278_v5 }
 0x35e   :  { %v1345_v13 = vpop.f32.mrf.mxu2  ;;  %v1325_v58 = vpop.f32.mrf.mxu3 }
 0x35f   :  { %v1349_v32 = vadd.f32 %v1345_v13, %v1307_v31  ;;  %v1348_v36 = vadd.f32 %v1325_v58, %v1306_v7 }
 0x372   :  { %v1471_v15 = vpop.f32.mrf.mxu0 }
 0x376   :  { %v1387_v55 = vpop.f32.mrf.mxu2  ;;  %v1367_v3 = vpop.f32.mrf.mxu3 }
 0x377   :  { %v1391_v14 = vadd.f32 %v1387_v55, %v1349_v32  ;;  %v1390_v38 = vadd.f32 %v1367_v3, %v1348_v36 }
 0x396   :  { %v1429_v42 = vpop.f32.mrf.mxu2  ;;  %v1409_v45 = vpop.f32.mrf.mxu3 }
 0x397   :  { %v1433_v6 = vadd.f32 %v1429_v42, %v1391_v14  ;;  %v1432_v53 = vadd.f32 %v1409_v45, %v1390_v38 }
 0x399   :  { %v1475_v57 = vadd.f32 %v1471_v15, %v1433_v6 }
 0x39b   :  { %1719 = vmatmul.msk.f32.vlgmr.msra.gmra.mxu2 %vm707_vm2, %v1475_v57 }
 0x3b6   :  { %v1451_v37 = vpop.f32.mrf.mxu3 }
 0x3b7   :  { %v1474_v62 = vadd.f32 %v1451_v37, %v1432_v53 }
 0x3b9   :  { %v1476_v46 = vmul.f32 0.01, %v1474_v62 }
 0x3bb   :  { %v1477_v22 = vmax.f32 %v1474_v62, %v1476_v46 }
 0x3bd   :  { %1594 = vmatmul.f32.vlgmr.msrb.gmra.mxu1 %v1477_v22 }
 0x41e   :  { %v1503_v28 = vpop.f32.mrf.mxu2 }
 0x41f   :  { %v1504_v21 = vadd.f32 %v1503_v28, %v1482_v20 }
 0x421   :  { %v1506_v39 = vmax.f32 %v1504_v21, 0.0 }
 0x423   :  { %1720 = vmatmul.msk.f32.vlgmr.msrb.gmra.mxu2 %vm707_vm2, %v1506_v39 }
 0x43a   :  { %v1595_v35 = vpop.f32.mrf.mxu1 }
 0x4a6   :  { %v1532_v8 = vpop.f32.mrf.mxu2 }
 0x4a7   :  { %v1533_v52 = vadd.f32 %v1532_v8, %v1511_v29 }
 0x4a9   :  { %1721 = vmatmul.msk.f32.vlgmr.msrb.gmra.mxu3 %vm707_vm2, %v1533_v52 }
 0x52c   :  { %v1575_v40 = vpop.f32.mrf.mxu3 }
 0x52d   :  { %v1596_v1 = vadd.f32 %v1595_v35, %v1575_v40 }
 0x52f   :  { %v1599_v4 = vadd.f32 %v1598_v41, %v1596_v1 }
 0x531   :  { %1600 = vst [vmem:[%s3043_s2] sm:$0xff] %v1599_v4 }

</bundles_post_ra>
